<compile_context>
chip_gen: v6e
topology: v6e:2x2x1
jax: 0.10.0
libtpu: 0.0.40
codegen_flags: <defaults>
</compile_context>

<pallas_src>
import math
import functools

import jax
import jax.numpy as jnp
from jax import lax
from jax.experimental import pallas as pl
from jax.experimental.pallas import tpu as pltpu

_LN_EPS = 1e-5


def _layernorm(v, gamma, beta):
    mu = jnp.mean(v, axis=-1, keepdims=True)
    var = jnp.mean(jnp.square(v - mu), axis=-1, keepdims=True)
    return (v - mu) * lax.rsqrt(var + _LN_EPS) * gamma + beta


def _gelu_exact(v):
    """Exact (erf-based) GELU matching torch.nn.GELU() default.

    erf via Abramowitz & Stegun 7.1.26 (max abs err ~1.5e-7), built only from
    mul/add/div/exp so it always lowers in Mosaic (VPU/EUP ops).
    """
    a1, a2, a3, a4, a5 = (0.254829592, -0.284496736, 1.421413741,
                          -1.453152027, 1.061405429)
    pconst = 0.3275911
    z = v * (1.0 / math.sqrt(2.0))
    az = jnp.abs(z)
    t = 1.0 / (1.0 + pconst * az)
    poly = ((((a5 * t + a4) * t + a3) * t + a2) * t + a1) * t
    erf_abs = 1.0 - poly * jnp.exp(-az * az)
    erf = jnp.where(z >= 0, erf_abs, -erf_abs)
    return 0.5 * v * (1.0 + erf)


def _decoder_block_kernel(x_q_ref, x_kv_ref,
                          g1_ref, be1_ref,
                          w_attn_ref, b_attn_ref, w_proj_ref, b_proj_ref,
                          g2_ref, be2_ref,
                          w_fc_ref, b_fc_ref, w_fc2_ref, b_fc2_ref,
                          o_ref,
                          kv_scratch, q_scratch, y_scratch,
                          *, n_heads: int, embed_dim: int, q_block: int,
                          compute_dtype):
    """One (batch, query-tile) per grid step.

    x_q_ref   : (1, TQ, C)  query tile / residual stream
    x_kv_ref  : (1, T,  C)  full sequence (K/V source, read only at qi == 0)
    o_ref     : (1, TQ, C)
    kv_scratch: (T, 2C)  compute_dtype VMEM — cached [K | V] for this batch
    q_scratch : (TQ, C)  compute_dtype VMEM — pre-scaled Q for this tile
    y_scratch : (TQ, C)  f32 VMEM — per-head attention outputs
    """
    C = embed_dim
    H = n_heads
    hd = C // H
    TQ = q_block
    T = x_kv_ref.shape[1]
    scale = 1.0 / math.sqrt(hd)
    f32 = jnp.float32

    def mx(a):                      # MXU operand dtype (f32 or bf16)
        return a.astype(compute_dtype)

    qi = pl.program_id(1)
    g1 = g1_ref[0]
    be1 = be1_ref[0]

    # ---- K/V cache: computed once per batch element, reused for all qi.
    #      The qi axis is "arbitrary" (not core-sharded), so the core that
    #      reads this scratch is the one that ran qi == 0 for this batch. ----
    @pl.when(qi == 0)
    def _compute_kv():
        h_kv = _layernorm(x_kv_ref[0], g1, be1)                       # (T, C)
        kv = jnp.dot(mx(h_kv), w_attn_ref[:, C:],
                     preferred_element_type=f32) + b_attn_ref[0, C:]  # (T, 2C)
        kv_scratch[...] = kv.astype(kv_scratch.dtype)

    # ---- Q projection for this query tile (pre-scaled by 1/sqrt(hd)) ----
    x_q = x_q_ref[0]                                                  # (TQ, C)
    h_q = _layernorm(x_q, g1, be1)
    q = jnp.dot(mx(h_q), w_attn_ref[:, :C],
                preferred_element_type=f32) + b_attn_ref[0, :C]
    q_scratch[...] = (q * scale).astype(q_scratch.dtype)

    # ---- causal mask, hoisted out of the head loop, offset by query tile ----
    q0 = qi * TQ
    row = lax.broadcasted_iota(jnp.int32, (TQ, T), 0) + q0
    col = lax.broadcasted_iota(jnp.int32, (TQ, T), 1)
    causal = col <= row
    neg_inf = f32(-1e30)

    # ---- per-head attention; heads processed in pairs so each store into
    #      y_scratch is 2*hd lanes wide (lane-dense 128 when hd == 64) ----
    pair = 2 if (H % 2 == 0) else 1
    for h0 in range(0, H, pair):
        outs = []
        for h in range(h0, h0 + pair):
            sl = slice(h * hd, (h + 1) * hd)
            q_h = q_scratch[:, sl]                          # (TQ, hd)
            k_h = kv_scratch[:, sl]                         # (T, hd)
            v_h = kv_scratch[:, C + h * hd: C + (h + 1) * hd]
            # contraction over last dims of both operands: no explicit k_h.T
            s = lax.dot_general(q_h, k_h,
                                dimension_numbers=(((1,), (1,)), ((), ())),
                                preferred_element_type=f32)  # (TQ, T)
            s = jnp.where(causal, s, neg_inf)
            s = s - jnp.max(s, axis=-1, keepdims=True)
            p = jnp.exp(s)
            p = p * pl.reciprocal(jnp.sum(p, axis=-1, keepdims=True),
                                  approx=True)
            # TODO(synk): PV matmul output width is hd (<=64); under-uses the
            #             256-wide MXU output columns on v6e/v7x.
            outs.append(jnp.dot(mx(p), v_h, preferred_element_type=f32))
        y_blk = outs[0] if pair == 1 else jnp.concatenate(outs, axis=-1)
        y_scratch[:, h0 * hd:(h0 + pair) * hd] = y_blk

    # ---- c_proj + residual 1 ----
    attn_out = jnp.dot(mx(y_scratch[...]), w_proj_ref[...],
                       preferred_element_type=f32) + b_proj_ref[0]
    x1 = x_q + attn_out                                     # (TQ, C)

    # ---- LN2 + MLP (exact GELU) + residual 2 ----
    h2 = _layernorm(x1, g2_ref[0], be2_ref[0])
    hfc = jnp.dot(mx(h2), w_fc_ref[...],
                  preferred_element_type=f32) + b_fc_ref[0]          # (TQ, 4C)
    hfc = _gelu_exact(hfc)
    mlp_out = jnp.dot(mx(hfc), w_fc2_ref[...],
                      preferred_element_type=f32) + b_fc2_ref[0]     # (TQ, C)

    o_ref[0] = (x1 + mlp_out).astype(o_ref.dtype)


def decoder_block(x, params, *, n_heads: int, q_block=None,
                  compute_dtype=jnp.bfloat16, weight_buffer_count=1,
                  vmem_limit_bytes=None):
    """x: (B, T, C) float32.  Returns (B, T, C). Eval-mode DecoderBlock."""
    B, T, C = x.shape
    # TQ = 128 feeds the v5e MXU fully; raise to 256 on v6e/v7x when VMEM allows.
    TQ = q_block if q_block is not None else min(T, 128)
    assert T % TQ == 0, "T must be divisible by the query tile"
    assert C % n_heads == 0

    cdt = compute_dtype
    itemsize = jnp.dtype(cdt).itemsize

    # Weights pre-cast to the MXU compute dtype in the wrapper (halves weight
    # HBM->VMEM DMA and VMEM residency, removes per-grid-step in-kernel casts).
    # Biases / LayerNorm params stay f32 (added to f32 accumulators).
    g1 = params["ln1_gamma"].astype(jnp.float32).reshape(1, C)
    be1 = params["ln1_beta"].astype(jnp.float32).reshape(1, C)
    w_attn = params["w_attn"].astype(cdt)
    b_attn = params["b_attn"].astype(jnp.float32).reshape(1, 3 * C)
    w_proj = params["w_proj"].astype(cdt)
    b_proj = params["b_proj"].astype(jnp.float32).reshape(1, C)
    g2 = params["ln2_gamma"].astype(jnp.float32).reshape(1, C)
    be2 = params["ln2_beta"].astype(jnp.float32).reshape(1, C)
    w_fc = params["w_fc"].astype(cdt)
    b_fc = params["b_fc"].astype(jnp.float32).reshape(1, 4 * C)
    w_fc2 = params["w_fc_proj"].astype(cdt)
    b_fc2 = params["b_fc_proj"].astype(jnp.float32).reshape(1, C)

    kernel = functools.partial(_decoder_block_kernel, n_heads=n_heads,
                               embed_dim=C, q_block=TQ, compute_dtype=cdt)

    const = lambda b, qi: (0, 0)       # grid-invariant weights / biases
    buf = pl.Buffered(weight_buffer_count)

    def wspec(shape):                   # single-buffered constant operand
        return pl.BlockSpec(shape, const, pipeline_mode=buf)

    if vmem_limit_bytes is None:
        # Explicit VMEM budget: single-buffered weights + biases + x/out
        # blocks + scratches + intermediate headroom, with 30% margin.
        weight_vmem = weight_buffer_count * 12 * C * C * itemsize
        bias_vmem = 2 * 13 * C * 4
        io_vmem = 2 * (T * C + 2 * TQ * C) * 4
        scratch_vmem = (2 * T * C + TQ * C) * itemsize + TQ * C * 4
        interm_vmem = 8 * TQ * 4 * C * 4 + 4 * TQ * T * 4
        vmem_limit_bytes = int(1.3 * (weight_vmem + bias_vmem + io_vmem
                                      + scratch_vmem + interm_vmem))
        vmem_limit_bytes = max(vmem_limit_bytes, 32 << 20)
        vmem_limit_bytes = min(vmem_limit_bytes, 128 << 20)

    return pl.pallas_call(
        kernel,
        out_shape=jax.ShapeDtypeStruct((B, T, C), x.dtype),
        grid_spec=pltpu.PrefetchScalarGridSpec(
            num_scalar_prefetch=0,
            grid=(B, T // TQ),
            in_specs=[
                pl.BlockSpec((1, TQ, C), lambda b, qi: (b, qi, 0)),  # x (q tile)
                pl.BlockSpec((1, T, C), lambda b, qi: (b, 0, 0)),    # x (full, K/V)
                wspec((1, C)),          # ln1 gamma
                wspec((1, C)),          # ln1 beta
                wspec((C, 3 * C)),      # W_attn
                wspec((1, 3 * C)),      # b_attn
                wspec((C, C)),          # W_proj (attn)
                wspec((1, C)),          # b_proj (attn)
                wspec((1, C)),          # ln2 gamma
                wspec((1, C)),          # ln2 beta
                wspec((C, 4 * C)),      # W_fc
                wspec((1, 4 * C)),      # b_fc
                wspec((4 * C, C)),      # W_fc_proj
                wspec((1, C)),          # b_fc_proj
            ],
            out_specs=pl.BlockSpec((1, TQ, C), lambda b, qi: (b, qi, 0)),
            scratch_shapes=[
                pltpu.VMEM((T, 2 * C), cdt),        # cached [K | V]
                pltpu.VMEM((TQ, C), cdt),           # pre-scaled Q
                pltpu.VMEM((TQ, C), jnp.float32),   # per-head attn outputs
            ],
        ),
        compiler_params=pltpu.CompilerParams(
            # qi must stay "arbitrary": the KV scratch written at qi == 0 is
            # reused by later qi steps of the same batch element.
            dimension_semantics=("parallel", "arbitrary"),
            vmem_limit_bytes=vmem_limit_bytes),
    )(x, x, g1, be1, w_attn, b_attn, w_proj, b_proj,
      g2, be2, w_fc, b_fc, w_fc2, b_fc2)


def _reference(x, params, n_heads):
    """Pure-JAX reference mirroring the PyTorch DecoderBlock.forward (eval)."""
    B, T, C = x.shape
    hd = C // n_heads

    def ln(v, g, b):
        mu = v.mean(-1, keepdims=True)
        var = jnp.square(v - mu).mean(-1, keepdims=True)
        return (v - mu) / jnp.sqrt(var + _LN_EPS) * g + b

    h = ln(x, params["ln1_gamma"], params["ln1_beta"])
    qkv = h @ params["w_attn"] + params["b_attn"]
    q, k, v = jnp.split(qkv, 3, axis=-1)

    def heads(t):
        return t.reshape(B, T, n_heads, hd).transpose(0, 2, 1, 3)

    q, k, v = heads(q), heads(k), heads(v)
    s = jnp.einsum("bhqd,bhkd->bhqk", q, k) / math.sqrt(hd)
    mask = jnp.tril(jnp.ones((T, T), dtype=bool))
    s = jnp.where(mask[None, None], s, -1e30)
    p = jax.nn.softmax(s, axis=-1)
    y = jnp.einsum("bhqk,bhkd->bhqd", p, v).transpose(0, 2, 1, 3).reshape(B, T, C)
    x = x + y @ params["w_proj"] + params["b_proj"]

    h2 = ln(x, params["ln2_gamma"], params["ln2_beta"])
    f = h2 @ params["w_fc"] + params["b_fc"]
    f = jax.nn.gelu(f, approximate=False)
    x = x + f @ params["w_fc_proj"] + params["b_fc_proj"]
    return x


if __name__ == "__main__":
    # Small, module-consistent shapes: (B, T, C) with C divisible by n_heads.
    B, T, C, H = 2, 16, 32, 4
    TQ = 8                       # query tile -> grid (B, T // TQ) = (2, 2)

    key = jax.random.PRNGKey(0)
    ks = jax.random.split(key, 13)
    x = jax.random.normal(ks[0], (B, T, C), dtype=jnp.float32)

    def lin_init(kw, kb, fan_in, fan_out):
        bound = 1.0 / math.sqrt(fan_in)
        w = jax.random.uniform(kw, (fan_in, fan_out), jnp.float32, -bound, bound)
        b = jax.random.uniform(kb, (fan_out,), jnp.float32, -bound, bound)
        return w, b

    w_attn, b_attn = lin_init(ks[1], ks[2], C, 3 * C)
    w_proj, b_proj = lin_init(ks[3], ks[4], C, C)
    w_fc, b_fc = lin_init(ks[5], ks[6], C, 4 * C)
    w_fcp, b_fcp = lin_init(ks[7], ks[8], 4 * C, C)

    params = dict(
        ln1_gamma=1.0 + 0.1 * jax.random.normal(ks[9], (C,), jnp.float32),
        ln1_beta=0.1 * jax.random.normal(ks[10], (C,), jnp.float32),
        ln2_gamma=1.0 + 0.1 * jax.random.normal(ks[11], (C,), jnp.float32),
        ln2_beta=0.1 * jax.random.normal(ks[12], (C,), jnp.float32),
        w_attn=w_attn, b_attn=b_attn, w_proj=w_proj, b_proj=b_proj,
        w_fc=w_fc, b_fc=b_fc, w_fc_proj=w_fcp, b_fc_proj=b_fcp,
    )

    ref = _reference(x, params, H)

    # f32 MXU operands — tight numerical check.
    out = decoder_block(x, params, n_heads=H, q_block=TQ,
                        compute_dtype=jnp.float32)
    out = jax.block_until_ready(out)
    assert out.shape == (B, T, C)
    assert jnp.allclose(out, ref, atol=2e-3, rtol=2e-3), \
        "f32 kernel mismatch vs JAX reference"

    # bf16 MXU operands / bf16 weights with f32 accumulation (default perf
    # path) — looser check.
    out_bf16 = decoder_block(x, params, n_heads=H, q_block=TQ,
                             compute_dtype=jnp.bfloat16)
    out_bf16 = jax.block_until_ready(out_bf16)
    assert jnp.allclose(out_bf16, ref, atol=5e-2, rtol=5e-2), \
        "bf16 kernel mismatch vs JAX reference"

    print("KERNEL_OK")
</pallas_src>

<mosaic_0001>
module attributes {stable_mosaic.version = 11 : i64} {
  func.func @_decoder_block_kernel(%arg0: i32, %arg1: i32, %arg2: memref<1x8x32xf32, #tpu.memory_space<vmem>>, %arg3: memref<1x16x32xf32, #tpu.memory_space<vmem>>, %arg4: memref<1x32xf32, #tpu.memory_space<vmem>>, %arg5: memref<1x32xf32, #tpu.memory_space<vmem>>, %arg6: memref<32x96xf32, #tpu.memory_space<vmem>>, %arg7: memref<1x96xf32, #tpu.memory_space<vmem>>, %arg8: memref<32x32xf32, #tpu.memory_space<vmem>>, %arg9: memref<1x32xf32, #tpu.memory_space<vmem>>, %arg10: memref<1x32xf32, #tpu.memory_space<vmem>>, %arg11: memref<1x32xf32, #tpu.memory_space<vmem>>, %arg12: memref<32x128xf32, #tpu.memory_space<vmem>>, %arg13: memref<1x128xf32, #tpu.memory_space<vmem>>, %arg14: memref<128x32xf32, #tpu.memory_space<vmem>>, %arg15: memref<1x32xf32, #tpu.memory_space<vmem>>, %arg16: memref<1x8x32xf32, #tpu.memory_space<vmem>>, %arg17: memref<16x64xf32, #tpu.memory_space<vmem>>, %arg18: memref<8x32xf32, #tpu.memory_space<vmem>>, %arg19: memref<8x32xf32, #tpu.memory_space<vmem>>) attributes {dimension_semantics = [#tpu.dimension_semantics<parallel>, #tpu.dimension_semantics<arbitrary>], iteration_bounds = array<i64: 2, 2>, scalar_prefetch = 0 : i64, scratch_operands = 3 : i64, tpu.core_type = #tpu.core_type<tc>, window_params = [{transform_indices = @transform_0, window_bounds = array<i64: 1, 8, 32>}, {transform_indices = @transform_1, window_bounds = array<i64: 1, 16, 32>}, {pipeline_mode = #tpu.pipeline_mode<synchronous>, transform_indices = @transform_2, window_bounds = array<i64: 1, 32>}, {pipeline_mode = #tpu.pipeline_mode<synchronous>, transform_indices = @transform_3, window_bounds = array<i64: 1, 32>}, {pipeline_mode = #tpu.pipeline_mode<synchronous>, transform_indices = @transform_4, window_bounds = array<i64: 32, 96>}, {pipeline_mode = #tpu.pipeline_mode<synchronous>, transform_indices = @transform_5, window_bounds = array<i64: 1, 96>}, {pipeline_mode = #tpu.pipeline_mode<synchronous>, transform_indices = @transform_6, window_bounds = array<i64: 32, 32>}, {pipeline_mode = #tpu.pipeline_mode<synchronous>, transform_indices = @transform_7, window_bounds = array<i64: 1, 32>}, {pipeline_mode = #tpu.pipeline_mode<synchronous>, transform_indices = @transform_8, window_bounds = array<i64: 1, 32>}, {pipeline_mode = #tpu.pipeline_mode<synchronous>, transform_indices = @transform_9, window_bounds = array<i64: 1, 32>}, {pipeline_mode = #tpu.pipeline_mode<synchronous>, transform_indices = @transform_10, window_bounds = array<i64: 32, 128>}, {pipeline_mode = #tpu.pipeline_mode<synchronous>, transform_indices = @transform_11, window_bounds = array<i64: 1, 128>}, {pipeline_mode = #tpu.pipeline_mode<synchronous>, transform_indices = @transform_12, window_bounds = array<i64: 128, 32>}, {pipeline_mode = #tpu.pipeline_mode<synchronous>, transform_indices = @transform_13, window_bounds = array<i64: 1, 32>}, {transform_indices = @transform_14, window_bounds = array<i64: 1, 8, 32>}]} {
    %c0 = arith.constant 0 : index
    %c0_0 = arith.constant 0 : index
    %0 = vector.load %arg4[%c0, %c0_0] : memref<1x32xf32, #tpu.memory_space<vmem>>, vector<1x32xf32>
    %1 = vector.shape_cast %0 : vector<1x32xf32> to vector<32xf32>
    %c0_1 = arith.constant 0 : index
    %c0_2 = arith.constant 0 : index
    %2 = vector.load %arg5[%c0_1, %c0_2] : memref<1x32xf32, #tpu.memory_space<vmem>>, vector<1x32xf32>
    %3 = vector.shape_cast %2 : vector<1x32xf32> to vector<32xf32>
    %c0_i32 = arith.constant 0 : i32
    %4 = arith.cmpi eq, %arg1, %c0_i32 : i32
    %5 = arith.extui %4 : i1 to i32
    %c0_i32_3 = arith.constant 0 : i32
    %6 = arith.cmpi ne, %5, %c0_i32_3 : i32
    scf.if %6 {
      %c0_104 = arith.constant 0 : index
      %c0_105 = arith.constant 0 : index
      %c0_106 = arith.constant 0 : index
      %216 = vector.load %arg3[%c0_104, %c0_105, %c0_106] : memref<1x16x32xf32, #tpu.memory_space<vmem>>, vector<1x16x32xf32>
      %217 = vector.shape_cast %216 : vector<1x16x32xf32> to vector<16x32xf32>
      %cst_107 = arith.constant dense<0.000000e+00> : vector<16xf32>
      %218 = vector.multi_reduction <add>, %217, %cst_107 [1] : vector<16x32xf32> to vector<16xf32>
      %219 = vector.shape_cast %218 : vector<16xf32> to vector<16x1xf32>
      %cst_108 = arith.constant 3.200000e+01 : f32
      %220 = vector.broadcast %cst_108 : f32 to vector<16x1xf32>
      %221 = arith.divf %219, %220 : vector<16x1xf32>
      %222 = vector.broadcast %221 : vector<16x1xf32> to vector<16x32xf32>
      %223 = arith.subf %217, %222 : vector<16x32xf32>
      %224 = arith.mulf %223, %223 : vector<16x32xf32>
      %cst_109 = arith.constant dense<0.000000e+00> : vector<16xf32>
      %225 = vector.multi_reduction <add>, %224, %cst_109 [1] : vector<16x32xf32> to vector<16xf32>
      %226 = vector.shape_cast %225 : vector<16xf32> to vector<16x1xf32>
      %cst_110 = arith.constant 3.200000e+01 : f32
      %227 = vector.broadcast %cst_110 : f32 to vector<16x1xf32>
      %228 = arith.divf %226, %227 : vector<16x1xf32>
      %229 = vector.broadcast %221 : vector<16x1xf32> to vector<16x32xf32>
      %230 = arith.subf %217, %229 : vector<16x32xf32>
      %cst_111 = arith.constant 9.99999974E-6 : f32
      %231 = vector.broadcast %cst_111 : f32 to vector<16x1xf32>
      %232 = arith.addf %228, %231 : vector<16x1xf32>
      %233 = math.rsqrt %232 : vector<16x1xf32>
      %234 = vector.broadcast %233 : vector<16x1xf32> to vector<16x32xf32>
      %235 = arith.mulf %230, %234 : vector<16x32xf32>
      %236 = vector.shape_cast %1 : vector<32xf32> to vector<1x32xf32>
      %237 = vector.broadcast %236 : vector<1x32xf32> to vector<16x32xf32>
      %238 = arith.mulf %235, %237 : vector<16x32xf32>
      %239 = vector.shape_cast %3 : vector<32xf32> to vector<1x32xf32>
      %240 = vector.broadcast %239 : vector<1x32xf32> to vector<16x32xf32>
      %241 = arith.addf %238, %240 : vector<16x32xf32>
      %c0_112 = arith.constant 0 : index
      %c32_113 = arith.constant 32 : index
      %242 = vector.load %arg6[%c0_112, %c32_113] : memref<32x96xf32, #tpu.memory_space<vmem>>, vector<32x64xf32>
      %cst_114 = arith.constant dense<0.000000e+00> : vector<16x64xf32>
      %243 = tpu.matmul %241, %242, %cst_114 {dimension_numbers = #tpu.dot_dimension_numbers<[1], [0], [0], [1], [0, 0, 1, 1], [], []>} : vector<16x32xf32>, vector<32x64xf32>, vector<16x64xf32> -> vector<16x64xf32>
      %c0_115 = arith.constant 0 : index
      %c32_116 = arith.constant 32 : index
      %244 = vector.load %arg7[%c0_115, %c32_116] : memref<1x96xf32, #tpu.memory_space<vmem>>, vector<1x64xf32>
      %245 = vector.shape_cast %244 : vector<1x64xf32> to vector<64xf32>
      %246 = vector.shape_cast %245 : vector<64xf32> to vector<1x64xf32>
      %247 = vector.broadcast %246 : vector<1x64xf32> to vector<16x64xf32>
      %248 = arith.addf %243, %247 : vector<16x64xf32>
      %c0_117 = arith.constant 0 : index
      %c0_118 = arith.constant 0 : index
      %249 = vector.load %arg17[%c0_117, %c0_118] : memref<16x64xf32, #tpu.memory_space<vmem>>, vector<16x64xf32>
      tpu.vector_store %arg17[%c0_117, %c0_118], %248 {strides = array<i32>} : memref<16x64xf32, #tpu.memory_space<vmem>>, vector<16x64xf32>,
    } else {
    }
    %c0_4 = arith.constant 0 : index
    %c0_5 = arith.constant 0 : index
    %c0_6 = arith.constant 0 : index
    %7 = vector.load %arg2[%c0_4, %c0_5, %c0_6] : memref<1x8x32xf32, #tpu.memory_space<vmem>>, vector<1x8x32xf32>
    %8 = vector.shape_cast %7 : vector<1x8x32xf32> to vector<8x32xf32>
    %cst = arith.constant dense<0.000000e+00> : vector<8xf32>
    %9 = vector.multi_reduction <add>, %8, %cst [1] : vector<8x32xf32> to vector<8xf32>
    %10 = vector.shape_cast %9 : vector<8xf32> to vector<8x1xf32>
    %cst_7 = arith.constant 3.200000e+01 : f32
    %11 = vector.broadcast %cst_7 : f32 to vector<8x1xf32>
    %12 = arith.divf %10, %11 : vector<8x1xf32>
    %13 = vector.broadcast %12 : vector<8x1xf32> to vector<8x32xf32>
    %14 = arith.subf %8, %13 : vector<8x32xf32>
    %15 = arith.mulf %14, %14 : vector<8x32xf32>
    %cst_8 = arith.constant dense<0.000000e+00> : vector<8xf32>
    %16 = vector.multi_reduction <add>, %15, %cst_8 [1] : vector<8x32xf32> to vector<8xf32>
    %17 = vector.shape_cast %16 : vector<8xf32> to vector<8x1xf32>
    %cst_9 = arith.constant 3.200000e+01 : f32
    %18 = vector.broadcast %cst_9 : f32 to vector<8x1xf32>
    %19 = arith.divf %17, %18 : vector<8x1xf32>
    %20 = vector.broadcast %12 : vector<8x1xf32> to vector<8x32xf32>
    %21 = arith.subf %8, %20 : vector<8x32xf32>
    %cst_10 = arith.constant 9.99999974E-6 : f32
    %22 = vector.broadcast %cst_10 : f32 to vector<8x1xf32>
    %23 = arith.addf %19, %22 : vector<8x1xf32>
    %24 = math.rsqrt %23 : vector<8x1xf32>
    %25 = vector.broadcast %24 : vector<8x1xf32> to vector<8x32xf32>
    %26 = arith.mulf %21, %25 : vector<8x32xf32>
    %27 = vector.shape_cast %1 : vector<32xf32> to vector<1x32xf32>
    %28 = vector.broadcast %27 : vector<1x32xf32> to vector<8x32xf32>
    %29 = arith.mulf %26, %28 : vector<8x32xf32>
    %30 = vector.shape_cast %3 : vector<32xf32> to vector<1x32xf32>
    %31 = vector.broadcast %30 : vector<1x32xf32> to vector<8x32xf32>
    %32 = arith.addf %29, %31 : vector<8x32xf32>
    %c0_11 = arith.constant 0 : index
    %c0_12 = arith.constant 0 : index
    %33 = vector.load %arg6[%c0_11, %c0_12] : memref<32x96xf32, #tpu.memory_space<vmem>>, vector<32x32xf32>
    %cst_13 = arith.constant dense<0.000000e+00> : vector<8x32xf32>
    %34 = tpu.matmul %32, %33, %cst_13 {dimension_numbers = #tpu.dot_dimension_numbers<[1], [0], [0], [1], [0, 0, 1, 1], [], []>} : vector<8x32xf32>, vector<32x32xf32>, vector<8x32xf32> -> vector<8x32xf32>
    %c0_14 = arith.constant 0 : index
    %c0_15 = arith.constant 0 : index
    %35 = vector.load %arg7[%c0_14, %c0_15] : memref<1x96xf32, #tpu.memory_space<vmem>>, vector<1x32xf32>
    %36 = vector.shape_cast %35 : vector<1x32xf32> to vector<32xf32>
    %37 = vector.shape_cast %36 : vector<32xf32> to vector<1x32xf32>
    %38 = vector.broadcast %37 : vector<1x32xf32> to vector<8x32xf32>
    %39 = arith.addf %34, %38 : vector<8x32xf32>
    %cst_16 = arith.constant 0.353553385 : f32
    %40 = vector.broadcast %cst_16 : f32 to vector<8x32xf32>
    %41 = arith.mulf %39, %40 : vector<8x32xf32>
    %c0_17 = arith.constant 0 : index
    %c0_18 = arith.constant 0 : index
    %42 = vector.load %arg18[%c0_17, %c0_18] : memref<8x32xf32, #tpu.memory_space<vmem>>, vector<8x32xf32>
    tpu.vector_store %arg18[%c0_17, %c0_18], %41 {strides = array<i32>} : memref<8x32xf32, #tpu.memory_space<vmem>>, vector<8x32xf32>,
    %c8_i32 = arith.constant 8 : i32
    %43 = arith.muli %arg1, %c8_i32 : i32
    %44 = tpu.iota {dimensions = array<i32: 0>} : vector<8x16xi32>
    %45 = vector.broadcast %43 : i32 to vector<8x16xi32>
    %46 = arith.addi %44, %45 : vector<8x16xi32>
    %47 = tpu.iota {dimensions = array<i32: 1>} : vector<8x16xi32>
    %48 = arith.cmpi sle, %47, %46 : vector<8x16xi32>
    %c0_19 = arith.constant 0 : index
    %c0_20 = arith.constant 0 : index
    %49 = vector.load %arg18[%c0_19, %c0_20] : memref<8x32xf32, #tpu.memory_space<vmem>>, vector<8x8xf32>
    %c0_21 = arith.constant 0 : index
    %c0_22 = arith.constant 0 : index
    %50 = vector.load %arg17[%c0_21, %c0_22] : memref<16x64xf32, #tpu.memory_space<vmem>>, vector<16x8xf32>
    %c0_23 = arith.constant 0 : index
    %c32 = arith.constant 32 : index
    %51 = vector.load %arg17[%c0_23, %c32] : memref<16x64xf32, #tpu.memory_space<vmem>>, vector<16x8xf32>
    %cst_24 = arith.constant dense<0.000000e+00> : vector<8x16xf32>
    %52 = tpu.matmul %49, %50, %cst_24 {dimension_numbers = #tpu.dot_dimension_numbers<[1], [1], [0], [0], [0, 0, 1, 0], [], []>} : vector<8x8xf32>, vector<16x8xf32>, vector<8x16xf32> -> vector<8x16xf32>
    %cst_25 = arith.constant -1.000000e+30 : f32
    %53 = vector.broadcast %cst_25 : f32 to vector<8x16xf32>
    %54 = arith.select %48, %52, %53 : vector<8x16xi1>, vector<8x16xf32>
    %cst_26 = arith.constant dense<0xFF800000> : vector<8xf32>
    %55 = vector.multi_reduction <maximumf>, %54, %cst_26 [1] : vector<8x16xf32> to vector<8xf32>
    %56 = vector.shape_cast %55 : vector<8xf32> to vector<8x1xf32>
    %57 = vector.broadcast %56 : vector<8x1xf32> to vector<8x16xf32>
    %58 = arith.subf %54, %57 : vector<8x16xf32>
    %59 = math.exp %58 : vector<8x16xf32>
    %cst_27 = arith.constant dense<0.000000e+00> : vector<8xf32>
    %60 = vector.multi_reduction <add>, %59, %cst_27 [1] : vector<8x16xf32> to vector<8xf32>
    %61 = vector.shape_cast %60 : vector<8xf32> to vector<8x1xf32>
    %62 = tpu.reciprocal %61 {approx = true} : vector<8x1xf32> -> vector<8x1xf32>
    %63 = vector.broadcast %62 : vector<8x1xf32> to vector<8x16xf32>
    %64 = arith.mulf %59, %63 : vector<8x16xf32>
    %cst_28 = arith.constant dense<0.000000e+00> : vector<8x8xf32>
    %65 = tpu.matmul %64, %51, %cst_28 {dimension_numbers = #tpu.dot_dimension_numbers<[1], [0], [0], [1], [0, 0, 1, 1], [], []>} : vector<8x16xf32>, vector<16x8xf32>, vector<8x8xf32> -> vector<8x8xf32>
    %c0_29 = arith.constant 0 : index
    %c8 = arith.constant 8 : index
    %66 = vector.load %arg18[%c0_29, %c8] : memref<8x32xf32, #tpu.memory_space<vmem>>, vector<8x8xf32>
    %c0_30 = arith.constant 0 : index
    %c8_31 = arith.constant 8 : index
    %67 = vector.load %arg17[%c0_30, %c8_31] : memref<16x64xf32, #tpu.memory_space<vmem>>, vector<16x8xf32>
    %c0_32 = arith.constant 0 : index
    %c40 = arith.constant 40 : index
    %68 = vector.load %arg17[%c0_32, %c40] : memref<16x64xf32, #tpu.memory_space<vmem>>, vector<16x8xf32>
    %cst_33 = arith.constant dense<0.000000e+00> : vector<8x16xf32>
    %69 = tpu.matmul %66, %67, %cst_33 {dimension_numbers = #tpu.dot_dimension_numbers<[1], [1], [0], [0], [0, 0, 1, 0], [], []>} : vector<8x8xf32>, vector<16x8xf32>, vector<8x16xf32> -> vector<8x16xf32>
    %cst_34 = arith.constant -1.000000e+30 : f32
    %70 = vector.broadcast %cst_34 : f32 to vector<8x16xf32>
    %71 = arith.select %48, %69, %70 : vector<8x16xi1>, vector<8x16xf32>
    %cst_35 = arith.constant dense<0xFF800000> : vector<8xf32>
    %72 = vector.multi_reduction <maximumf>, %71, %cst_35 [1] : vector<8x16xf32> to vector<8xf32>
    %73 = vector.shape_cast %72 : vector<8xf32> to vector<8x1xf32>
    %74 = vector.broadcast %73 : vector<8x1xf32> to vector<8x16xf32>
    %75 = arith.subf %71, %74 : vector<8x16xf32>
    %76 = math.exp %75 : vector<8x16xf32>
    %cst_36 = arith.constant dense<0.000000e+00> : vector<8xf32>
    %77 = vector.multi_reduction <add>, %76, %cst_36 [1] : vector<8x16xf32> to vector<8xf32>
    %78 = vector.shape_cast %77 : vector<8xf32> to vector<8x1xf32>
    %79 = tpu.reciprocal %78 {approx = true} : vector<8x1xf32> -> vector<8x1xf32>
    %80 = vector.broadcast %79 : vector<8x1xf32> to vector<8x16xf32>
    %81 = arith.mulf %76, %80 : vector<8x16xf32>
    %cst_37 = arith.constant dense<0.000000e+00> : vector<8x8xf32>
    %82 = tpu.matmul %81, %68, %cst_37 {dimension_numbers = #tpu.dot_dimension_numbers<[1], [0], [0], [1], [0, 0, 1, 1], [], []>} : vector<8x16xf32>, vector<16x8xf32>, vector<8x8xf32> -> vector<8x8xf32>
    %83 = tpu.concatenate %65, %82 in 1 : vector<8x8xf32>, vector<8x8xf32> -> vector<8x16xf32>
    %c0_38 = arith.constant 0 : index
    %c0_39 = arith.constant 0 : index
    %84 = vector.load %arg19[%c0_38, %c0_39] : memref<8x32xf32, #tpu.memory_space<vmem>>, vector<8x16xf32>
    tpu.vector_store %arg19[%c0_38, %c0_39], %83 {strides = array<i32>} : memref<8x32xf32, #tpu.memory_space<vmem>>, vector<8x16xf32>,
    %c0_40 = arith.constant 0 : index
    %c16 = arith.constant 16 : index
    %85 = vector.load %arg18[%c0_40, %c16] : memref<8x32xf32, #tpu.memory_space<vmem>>, vector<8x8xf32>
    %c0_41 = arith.constant 0 : index
    %c16_42 = arith.constant 16 : index
    %86 = vector.load %arg17[%c0_41, %c16_42] : memref<16x64xf32, #tpu.memory_space<vmem>>, vector<16x8xf32>
    %c0_43 = arith.constant 0 : index
    %c48 = arith.constant 48 : index
    %87 = vector.load %arg17[%c0_43, %c48] : memref<16x64xf32, #tpu.memory_space<vmem>>, vector<16x8xf32>
    %cst_44 = arith.constant dense<0.000000e+00> : vector<8x16xf32>
    %88 = tpu.matmul %85, %86, %cst_44 {dimension_numbers = #tpu.dot_dimension_numbers<[1], [1], [0], [0], [0, 0, 1, 0], [], []>} : vector<8x8xf32>, vector<16x8xf32>, vector<8x16xf32> -> vector<8x16xf32>
    %cst_45 = arith.constant -1.000000e+30 : f32
    %89 = vector.broadcast %cst_45 : f32 to vector<8x16xf32>
    %90 = arith.select %48, %88, %89 : vector<8x16xi1>, vector<8x16xf32>
    %cst_46 = arith.constant dense<0xFF800000> : vector<8xf32>
    %91 = vector.multi_reduction <maximumf>, %90, %cst_46 [1] : vector<8x16xf32> to vector<8xf32>
    %92 = vector.shape_cast %91 : vector<8xf32> to vector<8x1xf32>
    %93 = vector.broadcast %92 : vector<8x1xf32> to vector<8x16xf32>
    %94 = arith.subf %90, %93 : vector<8x16xf32>
    %95 = math.exp %94 : vector<8x16xf32>
    %cst_47 = arith.constant dense<0.000000e+00> : vector<8xf32>
    %96 = vector.multi_reduction <add>, %95, %cst_47 [1] : vector<8x16xf32> to vector<8xf32>
    %97 = vector.shape_cast %96 : vector<8xf32> to vector<8x1xf32>
    %98 = tpu.reciprocal %97 {approx = true} : vector<8x1xf32> -> vector<8x1xf32>
    %99 = vector.broadcast %98 : vector<8x1xf32> to vector<8x16xf32>
    %100 = arith.mulf %95, %99 : vector<8x16xf32>
    %cst_48 = arith.constant dense<0.000000e+00> : vector<8x8xf32>
    %101 = tpu.matmul %100, %87, %cst_48 {dimension_numbers = #tpu.dot_dimension_numbers<[1], [0], [0], [1], [0, 0, 1, 1], [], []>} : vector<8x16xf32>, vector<16x8xf32>, vector<8x8xf32> -> vector<8x8xf32>
    %c0_49 = arith.constant 0 : index
    %c24 = arith.constant 24 : index
    %102 = vector.load %arg18[%c0_49, %c24] : memref<8x32xf32, #tpu.memory_space<vmem>>, vector<8x8xf32>
    %c0_50 = arith.constant 0 : index
    %c24_51 = arith.constant 24 : index
    %103 = vector.load %arg17[%c0_50, %c24_51] : memref<16x64xf32, #tpu.memory_space<vmem>>, vector<16x8xf32>
    %c0_52 = arith.constant 0 : index
    %c56 = arith.constant 56 : index
    %104 = vector.load %arg17[%c0_52, %c56] : memref<16x64xf32, #tpu.memory_space<vmem>>, vector<16x8xf32>
    %cst_53 = arith.constant dense<0.000000e+00> : vector<8x16xf32>
    %105 = tpu.matmul %102, %103, %cst_53 {dimension_numbers = #tpu.dot_dimension_numbers<[1], [1], [0], [0], [0, 0, 1, 0], [], []>} : vector<8x8xf32>, vector<16x8xf32>, vector<8x16xf32> -> vector<8x16xf32>
    %cst_54 = arith.constant -1.000000e+30 : f32
    %106 = vector.broadcast %cst_54 : f32 to vector<8x16xf32>
    %107 = arith.select %48, %105, %106 : vector<8x16xi1>, vector<8x16xf32>
    %cst_55 = arith.constant dense<0xFF800000> : vector<8xf32>
    %108 = vector.multi_reduction <maximumf>, %107, %cst_55 [1] : vector<8x16xf32> to vector<8xf32>
    %109 = vector.shape_cast %108 : vector<8xf32> to vector<8x1xf32>
    %110 = vector.broadcast %109 : vector<8x1xf32> to vector<8x16xf32>
    %111 = arith.subf %107, %110 : vector<8x16xf32>
    %112 = math.exp %111 : vector<8x16xf32>
    %cst_56 = arith.constant dense<0.000000e+00> : vector<8xf32>
    %113 = vector.multi_reduction <add>, %112, %cst_56 [1] : vector<8x16xf32> to vector<8xf32>
    %114 = vector.shape_cast %113 : vector<8xf32> to vector<8x1xf32>
    %115 = tpu.reciprocal %114 {approx = true} : vector<8x1xf32> -> vector<8x1xf32>
    %116 = vector.broadcast %115 : vector<8x1xf32> to vector<8x16xf32>
    %117 = arith.mulf %112, %116 : vector<8x16xf32>
    %cst_57 = arith.constant dense<0.000000e+00> : vector<8x8xf32>
    %118 = tpu.matmul %117, %104, %cst_57 {dimension_numbers = #tpu.dot_dimension_numbers<[1], [0], [0], [1], [0, 0, 1, 1], [], []>} : vector<8x16xf32>, vector<16x8xf32>, vector<8x8xf32> -> vector<8x8xf32>
    %119 = tpu.concatenate %101, %118 in 1 : vector<8x8xf32>, vector<8x8xf32> -> vector<8x16xf32>
    %c0_58 = arith.constant 0 : index
    %c16_59 = arith.constant 16 : index
    %120 = vector.load %arg19[%c0_58, %c16_59] : memref<8x32xf32, #tpu.memory_space<vmem>>, vector<8x16xf32>
    tpu.vector_store %arg19[%c0_58, %c16_59], %119 {strides = array<i32>} : memref<8x32xf32, #tpu.memory_space<vmem>>, vector<8x16xf32>,
    %c0_60 = arith.constant 0 : index
    %c0_61 = arith.constant 0 : index
    %121 = vector.load %arg19[%c0_60, %c0_61] : memref<8x32xf32, #tpu.memory_space<vmem>>, vector<8x32xf32>
    %c0_62 = arith.constant 0 : index
    %c0_63 = arith.constant 0 : index
    %122 = vector.load %arg8[%c0_62, %c0_63] : memref<32x32xf32, #tpu.memory_space<vmem>>, vector<32x32xf32>
    %cst_64 = arith.constant dense<0.000000e+00> : vector<8x32xf32>
    %123 = tpu.matmul %121, %122, %cst_64 {dimension_numbers = #tpu.dot_dimension_numbers<[1], [0], [0], [1], [0, 0, 1, 1], [], []>} : vector<8x32xf32>, vector<32x32xf32>, vector<8x32xf32> -> vector<8x32xf32>
    %c0_65 = arith.constant 0 : index
    %c0_66 = arith.constant 0 : index
    %124 = vector.load %arg9[%c0_65, %c0_66] : memref<1x32xf32, #tpu.memory_space<vmem>>, vector<1x32xf32>
    %125 = vector.shape_cast %124 : vector<1x32xf32> to vector<32xf32>
    %126 = vector.shape_cast %125 : vector<32xf32> to vector<1x32xf32>
    %127 = vector.broadcast %126 : vector<1x32xf32> to vector<8x32xf32>
    %128 = arith.addf %123, %127 : vector<8x32xf32>
    %129 = arith.addf %8, %128 : vector<8x32xf32>
    %c0_67 = arith.constant 0 : index
    %c0_68 = arith.constant 0 : index
    %130 = vector.load %arg10[%c0_67, %c0_68] : memref<1x32xf32, #tpu.memory_space<vmem>>, vector<1x32xf32>
    %131 = vector.shape_cast %130 : vector<1x32xf32> to vector<32xf32>
    %c0_69 = arith.constant 0 : index
    %c0_70 = arith.constant 0 : index
    %132 = vector.load %arg11[%c0_69, %c0_70] : memref<1x32xf32, #tpu.memory_space<vmem>>, vector<1x32xf32>
    %133 = vector.shape_cast %132 : vector<1x32xf32> to vector<32xf32>
    %cst_71 = arith.constant dense<0.000000e+00> : vector<8xf32>
    %134 = vector.multi_reduction <add>, %129, %cst_71 [1] : vector<8x32xf32> to vector<8xf32>
    %135 = vector.shape_cast %134 : vector<8xf32> to vector<8x1xf32>
    %cst_72 = arith.constant 3.200000e+01 : f32
    %136 = vector.broadcast %cst_72 : f32 to vector<8x1xf32>
    %137 = arith.divf %135, %136 : vector<8x1xf32>
    %138 = vector.broadcast %137 : vector<8x1xf32> to vector<8x32xf32>
    %139 = arith.subf %129, %138 : vector<8x32xf32>
    %140 = arith.mulf %139, %139 : vector<8x32xf32>
    %cst_73 = arith.constant dense<0.000000e+00> : vector<8xf32>
    %141 = vector.multi_reduction <add>, %140, %cst_73 [1] : vector<8x32xf32> to vector<8xf32>
    %142 = vector.shape_cast %141 : vector<8xf32> to vector<8x1xf32>
    %cst_74 = arith.constant 3.200000e+01 : f32
    %143 = vector.broadcast %cst_74 : f32 to vector<8x1xf32>
    %144 = arith.divf %142, %143 : vector<8x1xf32>
    %145 = vector.broadcast %137 : vector<8x1xf32> to vector<8x32xf32>
    %146 = arith.subf %129, %145 : vector<8x32xf32>
    %cst_75 = arith.constant 9.99999974E-6 : f32
    %147 = vector.broadcast %cst_75 : f32 to vector<8x1xf32>
    %148 = arith.addf %144, %147 : vector<8x1xf32>
    %149 = math.rsqrt %148 : vector<8x1xf32>
    %150 = vector.broadcast %149 : vector<8x1xf32> to vector<8x32xf32>
    %151 = arith.mulf %146, %150 : vector<8x32xf32>
    %152 = vector.shape_cast %131 : vector<32xf32> to vector<1x32xf32>
    %153 = vector.broadcast %152 : vector<1x32xf32> to vector<8x32xf32>
    %154 = arith.mulf %151, %153 : vector<8x32xf32>
    %155 = vector.shape_cast %133 : vector<32xf32> to vector<1x32xf32>
    %156 = vector.broadcast %155 : vector<1x32xf32> to vector<8x32xf32>
    %157 = arith.addf %154, %156 : vector<8x32xf32>
    %c0_76 = arith.constant 0 : index
    %c0_77 = arith.constant 0 : index
    %158 = vector.load %arg12[%c0_76, %c0_77] : memref<32x128xf32, #tpu.memory_space<vmem>>, vector<32x128xf32>
    %cst_78 = arith.constant dense<0.000000e+00> : vector<8x128xf32>
    %159 = tpu.matmul %157, %158, %cst_78 {dimension_numbers = #tpu.dot_dimension_numbers<[1], [0], [0], [1], [0, 0, 1, 1], [], []>} : vector<8x32xf32>, vector<32x128xf32>, vector<8x128xf32> -> vector<8x128xf32>
    %c0_79 = arith.constant 0 : index
    %c0_80 = arith.constant 0 : index
    %160 = vector.load %arg13[%c0_79, %c0_80] : memref<1x128xf32, #tpu.memory_space<vmem>>, vector<1x128xf32>
    %161 = vector.shape_cast %160 : vector<1x128xf32> to vector<128xf32>
    %162 = vector.shape_cast %161 : vector<128xf32> to vector<1x128xf32>
    %163 = vector.broadcast %162 : vector<1x128xf32> to vector<8x128xf32>
    %164 = arith.addf %159, %163 : vector<8x128xf32>
    %cst_81 = arith.constant 0.707106769 : f32
    %165 = vector.broadcast %cst_81 : f32 to vector<8x128xf32>
    %166 = arith.mulf %164, %165 : vector<8x128xf32>
    %167 = math.absf %166 : vector<8x128xf32>
    %cst_82 = arith.constant 0.327591091 : f32
    %168 = vector.broadcast %cst_82 : f32 to vector<8x128xf32>
    %169 = arith.mulf %168, %167 : vector<8x128xf32>
    %cst_83 = arith.constant 1.000000e+00 : f32
    %170 = vector.broadcast %cst_83 : f32 to vector<8x128xf32>
    %171 = arith.addf %170, %169 : vector<8x128xf32>
    %cst_84 = arith.constant 1.000000e+00 : f32
    %172 = vector.broadcast %cst_84 : f32 to vector<8x128xf32>
    %173 = arith.divf %172, %171 : vector<8x128xf32>
    %cst_85 = arith.constant 1.06140542 : f32
    %174 = vector.broadcast %cst_85 : f32 to vector<8x128xf32>
    %175 = arith.mulf %174, %173 : vector<8x128xf32>
    %cst_86 = arith.constant -1.45315206 : f32
    %176 = vector.broadcast %cst_86 : f32 to vector<8x128xf32>
    %177 = arith.addf %175, %176 : vector<8x128xf32>
    %178 = arith.mulf %177, %173 : vector<8x128xf32>
    %cst_87 = arith.constant 1.42141378 : f32
    %179 = vector.broadcast %cst_87 : f32 to vector<8x128xf32>
    %180 = arith.addf %178, %179 : vector<8x128xf32>
    %181 = arith.mulf %180, %173 : vector<8x128xf32>
    %cst_88 = arith.constant -0.284496725 : f32
    %182 = vector.broadcast %cst_88 : f32 to vector<8x128xf32>
    %183 = arith.addf %181, %182 : vector<8x128xf32>
    %184 = arith.mulf %183, %173 : vector<8x128xf32>
    %cst_89 = arith.constant 0.254829586 : f32
    %185 = vector.broadcast %cst_89 : f32 to vector<8x128xf32>
    %186 = arith.addf %184, %185 : vector<8x128xf32>
    %187 = arith.mulf %186, %173 : vector<8x128xf32>
    %cst_90 = arith.constant 0.000000e+00 : f32
    %188 = vector.broadcast %cst_90 : f32 to vector<8x128xf32>
    %189 = arith.subf %188, %167 : vector<8x128xf32>
    %190 = arith.mulf %189, %167 : vector<8x128xf32>
    %191 = math.exp %190 : vector<8x128xf32>
    %192 = arith.mulf %187, %191 : vector<8x128xf32>
    %cst_91 = arith.constant 1.000000e+00 : f32
    %193 = vector.broadcast %cst_91 : f32 to vector<8x128xf32>
    %194 = arith.subf %193, %192 : vector<8x128xf32>
    %cst_92 = arith.constant 0.000000e+00 : f32
    %195 = vector.broadcast %cst_92 : f32 to vector<8x128xf32>
    %196 = arith.cmpf oge, %166, %195 : vector<8x128xf32>
    %cst_93 = arith.constant 0.000000e+00 : f32
    %197 = vector.broadcast %cst_93 : f32 to vector<8x128xf32>
    %198 = arith.subf %197, %194 : vector<8x128xf32>
    %199 = arith.select %196, %194, %198 : vector<8x128xi1>, vector<8x128xf32>
    %cst_94 = arith.constant 5.000000e-01 : f32
    %200 = vector.broadcast %cst_94 : f32 to vector<8x128xf32>
    %201 = arith.mulf %200, %164 : vector<8x128xf32>
    %cst_95 = arith.constant 1.000000e+00 : f32
    %202 = vector.broadcast %cst_95 : f32 to vector<8x128xf32>
    %203 = arith.addf %202, %199 : vector<8x128xf32>
    %204 = arith.mulf %201, %203 : vector<8x128xf32>
    %c0_96 = arith.constant 0 : index
    %c0_97 = arith.constant 0 : index
    %205 = vector.load %arg14[%c0_96, %c0_97] : memref<128x32xf32, #tpu.memory_space<vmem>>, vector<128x32xf32>
    %cst_98 = arith.constant dense<0.000000e+00> : vector<8x32xf32>
    %206 = tpu.matmul %204, %205, %cst_98 {dimension_numbers = #tpu.dot_dimension_numbers<[1], [0], [0], [1], [0, 0, 1, 1], [], []>} : vector<8x128xf32>, vector<128x32xf32>, vector<8x32xf32> -> vector<8x32xf32>
    %c0_99 = arith.constant 0 : index
    %c0_100 = arith.constant 0 : index
    %207 = vector.load %arg15[%c0_99, %c0_100] : memref<1x32xf32, #tpu.memory_space<vmem>>, vector<1x32xf32>
    %208 = vector.shape_cast %207 : vector<1x32xf32> to vector<32xf32>
    %209 = vector.shape_cast %208 : vector<32xf32> to vector<1x32xf32>
    %210 = vector.broadcast %209 : vector<1x32xf32> to vector<8x32xf32>
    %211 = arith.addf %206, %210 : vector<8x32xf32>
    %212 = arith.addf %129, %211 : vector<8x32xf32>
    %c0_101 = arith.constant 0 : index
    %c0_102 = arith.constant 0 : index
    %c0_103 = arith.constant 0 : index
    %213 = vector.load %arg16[%c0_101, %c0_102, %c0_103] : memref<1x8x32xf32, #tpu.memory_space<vmem>>, vector<1x8x32xf32>
    %214 = vector.shape_cast %213 : vector<1x8x32xf32> to vector<8x32xf32>
    %215 = vector.shape_cast %212 : vector<8x32xf32> to vector<1x8x32xf32>
    tpu.vector_store %arg16[%c0_101, %c0_102, %c0_103], %215 {strides = array<i32>} : memref<1x8x32xf32, #tpu.memory_space<vmem>>, vector<1x8x32xf32>,
    return
  }
  func.func @transform_0(%arg0: i32, %arg1: i32) -> (i32, i32, i32) {
    %c0_i32 = arith.constant 0 : i32
    %c0_i32_0 = arith.constant 0 : i32
    return %arg0, %arg1, %c0_i32 : i32, i32, i32
  }
  func.func @transform_1(%arg0: i32, %arg1: i32) -> (i32, i32, i32) {
    %c0_i32 = arith.constant 0 : i32
    %c0_i32_0 = arith.constant 0 : i32
    %c0_i32_1 = arith.constant 0 : i32
    return %arg0, %c0_i32, %c0_i32_0 : i32, i32, i32
  }
  func.func @transform_2(%arg0: i32, %arg1: i32) -> (i32, i32) {
    %c0_i32 = arith.constant 0 : i32
    %c0_i32_0 = arith.constant 0 : i32
    %c0_i32_1 = arith.constant 0 : i32
    return %c0_i32, %c0_i32_0 : i32, i32
  }
  func.func @transform_3(%arg0: i32, %arg1: i32) -> (i32, i32) {
    %c0_i32 = arith.constant 0 : i32
    %c0_i32_0 = arith.constant 0 : i32
    %c0_i32_1 = arith.constant 0 : i32
    return %c0_i32, %c0_i32_0 : i32, i32
  }
  func.func @transform_4(%arg0: i32, %arg1: i32) -> (i32, i32) {
    %c0_i32 = arith.constant 0 : i32
    %c0_i32_0 = arith.constant 0 : i32
    %c0_i32_1 = arith.constant 0 : i32
    return %c0_i32, %c0_i32_0 : i32, i32
  }
  func.func @transform_5(%arg0: i32, %arg1: i32) -> (i32, i32) {
    %c0_i32 = arith.constant 0 : i32
    %c0_i32_0 = arith.constant 0 : i32
    %c0_i32_1 = arith.constant 0 : i32
    return %c0_i32, %c0_i32_0 : i32, i32
  }
  func.func @transform_6(%arg0: i32, %arg1: i32) -> (i32, i32) {
    %c0_i32 = arith.constant 0 : i32
    %c0_i32_0 = arith.constant 0 : i32
    %c0_i32_1 = arith.constant 0 : i32
    return %c0_i32, %c0_i32_0 : i32, i32
  }
  func.func @transform_7(%arg0: i32, %arg1: i32) -> (i32, i32) {
    %c0_i32 = arith.constant 0 : i32
    %c0_i32_0 = arith.constant 0 : i32
    %c0_i32_1 = arith.constant 0 : i32
    return %c0_i32, %c0_i32_0 : i32, i32
  }
  func.func @transform_8(%arg0: i32, %arg1: i32) -> (i32, i32) {
    %c0_i32 = arith.constant 0 : i32
    %c0_i32_0 = arith.constant 0 : i32
    %c0_i32_1 = arith.constant 0 : i32
    return %c0_i32, %c0_i32_0 : i32, i32
  }
  func.func @transform_9(%arg0: i32, %arg1: i32) -> (i32, i32) {
    %c0_i32 = arith.constant 0 : i32
    %c0_i32_0 = arith.constant 0 : i32
    %c0_i32_1 = arith.constant 0 : i32
    return %c0_i32, %c0_i32_0 : i32, i32
  }
  func.func @transform_10(%arg0: i32, %arg1: i32) -> (i32, i32) {
    %c0_i32 = arith.constant 0 : i32
    %c0_i32_0 = arith.constant 0 : i32
    %c0_i32_1 = arith.constant 0 : i32
    return %c0_i32, %c0_i32_0 : i32, i32
  }
  func.func @transform_11(%arg0: i32, %arg1: i32) -> (i32, i32) {
    %c0_i32 = arith.constant 0 : i32
    %c0_i32_0 = arith.constant 0 : i32
    %c0_i32_1 = arith.constant 0 : i32
    return %c0_i32, %c0_i32_0 : i32, i32
  }
  func.func @transform_12(%arg0: i32, %arg1: i32) -> (i32, i32) {
    %c0_i32 = arith.constant 0 : i32
    %c0_i32_0 = arith.constant 0 : i32
    %c0_i32_1 = arith.constant 0 : i32
    return %c0_i32, %c0_i32_0 : i32, i32
  }
  func.func @transform_13(%arg0: i32, %arg1: i32) -> (i32, i32) {
    %c0_i32 = arith.constant 0 : i32
    %c0_i32_0 = arith.constant 0 : i32
    %c0_i32_1 = arith.constant 0 : i32
    return %c0_i32, %c0_i32_0 : i32, i32
  }
  func.func @transform_14(%arg0: i32, %arg1: i32) -> (i32, i32, i32) {
    %c0_i32 = arith.constant 0 : i32
    %c0_i32_0 = arith.constant 0 : i32
    return %arg0, %arg1, %c0_i32 : i32, i32, i32
  }
}

</mosaic_0001>

<bundles_post_ra>
// kernel: tpu_custom_call.1
= control target key start
LH: loop header
LB: loop body
LE: loop exit
PB: predicated region body
PF: predicated region fallthrough
CT: control target
= control target key end

     0   :  { %s2927_s0 = inlined_call_operand.vmem [shape: f32[2,16,32], index: 0, kind: input, shape index: {}]   ;;  %s2928_s1 = inlined_call_operand.vmem [shape: f32[2,16,32], index: 1, kind: input, shape index: {}]   ;;  %s2929_s2 = inlined_call_operand.vmem [shape: f32[1,32], index: 2, kind: input, shape index: {}]   ;;  %s2930_s3 = inlined_call_operand.vmem [shape: f32[1,32], index: 3, kind: input, shape index: {}]   ;;  %s2931_s4 = inlined_call_operand.vmem [shape: f32[32,96], index: 4, kind: input, shape index: {}]   ;;  %s2932_s5 = inlined_call_operand.vmem [shape: f32[1,96], index: 5, kind: input, shape index: {}]   ;;  %s2933_s6 = inlined_call_operand.vmem [shape: f32[32,32], index: 6, kind: input, shape index: {}]   ;;  %s2934_s7 = inlined_call_operand.vmem [shape: f32[1,32], index: 7, kind: input, shape index: {}]   ;;  %s2935_s8 = inlined_call_operand.vmem [shape: f32[1,32], index: 8, kind: input, shape index: {}]   ;;  %s2936_s9 = inlined_call_operand.vmem [shape: f32[1,32], index: 9, kind: input, shape index: {}]   ;;  %s2937_s10 = inlined_call_operand.vmem [shape: f32[32,128], index: 10, kind: input, shape index: {}]   ;;  %s2938_s11 = inlined_call_operand.vmem [shape: f32[1,128], index: 11, kind: input, shape index: {}]   ;;  %s2939_s12 = inlined_call_operand.vmem [shape: f32[128,32], index: 12, kind: input, shape index: {}]   ;;  %s2940_s13 = inlined_call_operand.vmem [shape: f32[1,32], index: 13, kind: input, shape index: {}]   ;;  %s2941_s14 = inlined_call_operand.hbm [shape: f32[2,16,32], index: 14, kind: output, shape index: {}]  }
   0x1   :  { %2952 = sst [smem:[#allocation17_spill]] %s2929_s2 }
   0x2   :  { %2953 = sst [smem:[#allocation18_spill]] %s2940_s13 }
   0x3   :  { %2954 = sst [smem:[#allocation19_spill]] %s2941_s14 }
   0x4   :  { %19 = vsyncpa [#allocation6], 0 }
   0x5   :  { %21 = vsyncpa [#allocation6 + $0x1], 0  ;;  %s2480_s29 = smov 0   ;;  %s2482_s30 = smov 0  }
   0x6   :  { %s2484_s15 = smov 0   ;;  %s2486_s16 = smov 0  }
   0x7   :  { %s2488_s17 = smov 0   ;;  %s2490_s18 = smov 0  }
   0x8   :  { %s2492_s19 = smov 0   ;;  %s2494_s20 = smov 0  }
   0x9 LB: > { %2955 = sst [smem:[#allocation8_spill]] %s2362_s29  ;;  %s1944_s21 = sadd.s32 4294967295, %s2390_s20   ;;  %s2390_s20 = sphi %s2494_s20, %s27_s20   ;;  %s2386_s19 = sphi %s2492_s19, %s2977_s19   ;;  %s2382_s18 = sphi %s2490_s18, %s2976_s18   ;;  %s2378_s17 = sphi %s2488_s17, %s2975_s17   ;;  %s2374_s16 = sphi %s2486_s16, %s2974_s16   ;;  %s2370_s15 = sphi %s2484_s15, %s2973_s15   ;;  %s2366_s30 = sphi %s2482_s30, %s2979_s30   ;;  %s2362_s29 = sphi %s2480_s29, %s2978_s29  }
   0xa   : > { %2956 = sst [smem:[#allocation9_spill]] %s2370_s15  ;;  %s1945_s22 = sadd.s32 4294967294, %s2390_s20  }
   0xb   : > { %2957 = sst [smem:[#allocation10_spill]] %s2382_s18  ;;  %s36_s23 = sadd.s32 1, %s2382_s18 }
   0xc   : > { %2958 = sst [smem:[#allocation11_spill]] %s2386_s19  ;;  %p37_p0 = scmp.ge.s32.totalorder %s36_s23, 2 }
   0xd   : > { %2959 = sst [smem:[#allocation12_spill]] %s2390_s20  ;;  %s39_s24 = sadd.s32 1, %s2386_s19 }
   0xe   : > { %p364_p1 = scmp.ne.s32.totalorder %s2370_s15, %s2366_s30  ;;  %p365_p2 = scmp.eq.s32.totalorder %s1944_s21, 3 }
   0xf   : > { %s2981_s23 = smov (%p37_p0, %s36_s23), 0  ;;  %s2983_s24 = smov (!%p37_p0, %s39_s24), %s2386_s19 }
  0x10   : > { %2960 = sst [smem:[#allocation13_spill]] %s2981_s23  ;;  %s350_s25 = ssub.s32 %s2382_s18, %s2981_s23 }
  0x11   : > { %p2531_p3 = por %p365_p2, %p364_p1  ;;  %p41_p4 = scmp.ge.s32.totalorder %s2983_s24, 2 }
  0x12   : > { %p370_p5 = scmp.ne.s32.totalorder %s2366_s30, %s2362_s29  ;;  %p371_p6 = scmp.eq.s32.totalorder %s1945_s22, 3 }
  0x13   : > { %p1948_p7 = scmp.ge.s32.totalorder %s2390_s20, 1  ;;  %s2985_s24 = smov (%p41_p4, %s2983_s24), 0 }
  0x14   : > { %2962 = sst [smem:[#allocation14_spill]] %s2985_s24  ;;  %p2540_p8 = por %p371_p6, %p370_p5 }
  0x15   : > { %p444_p9 = scmp.lt.s32.totalorder %s2390_s20, 5  ;;  %s349_s28 = ssub.s32 %s2386_s19, %s2985_s24 }
  0x16   : > { %s2963_s27 = scalar_select %p2540_p8, 1, 0 }
  0x17   : > { %s354_s21 = sadd.s32 1, %s2370_s15  ;;  %s351_s14 = sor.u32 %s350_s25, %s349_s28 }
  0x18   : > { %2964 = sst [smem:[#allocation15_spill]] %s2963_s27  ;;  %p445_p10 = pnand %p1948_p7, %p444_p9 }
  0x19   : > { %p352_p11 = scmp.eq.s32.totalorder %s351_s14, 0  ;;  %s495_s22 = sand.u32 (!%p445_p10), 1, %s2366_s30  }
  0x1a   : > { %448 = sbr.rel (%p445_p10) target bundleno = 3601 (0xe11), region = 76  ;;  %p498_p12 = scmp.lt.s32.totalorder (!%p445_p10), %s2378_s17, 1 }
  0x1b   : > { %s2549_s23 = scalar_select %p352_p11, %s2370_s15, %s354_s21  }
  0x1c   : > { %s2966_s2 = sld [smem:[#allocation17_spill]] (!%p445_p10)  ;;  %s2565_s14 = sshll.u32 (!%p445_p10), %s495_s22, 3 }
  0x1d   : > { %2965 = sst [smem:[#allocation16_spill]] %s2549_s23  ;;  %p500_p13 = scmp.lt.s32.totalorder (!%p445_p10), %s2374_s16, 1 }
  0x1e   : > { %s497_s25 = scalar_lea.vmem (!%p445_p10), [#allocation5], %s2565_s14  ;;  %p1954_p0 = scmp.ne.s32.totalorder (!%p445_p10), %s2374_s16, 0 }
  0x1f   : > { %v2561_v1 = vld [vmem:[%s2930_s3] sm:$0x1]  ;;  %s499_s28 = scalar_select %p498_p12, %s2378_s17, 1 }
  0x20   : > { %s501_s21 = scalar_select %p500_p13, %s2374_s16, 1 }
  0x21   : > { %s1950_s19 = sshll.u32 %s499_s28, 1  ;;  %s1989_s23 = sshll.u32 %s499_s28, 4 }
  0x22   : > { %v2556_v0 = vld [vmem:[%s2966_s2] sm:$0x1]  ;;  %s503_s15 = sadd.s32 %s1950_s19, %s501_s21  ;;  %s510_s29 = scalar_lea.vmem %s2928_s1, %s1989_s23 }
  0x23   : > { %s1951_s18 = sshll.u32 %s503_s15, 3  ;;  %516 = sbr.rel (%p1954_p0) target bundleno = 551 (0x227), region = 80 }
  0x24   : > { %s2576_s24 = scalar_lea.vmem %s2927_s0, %s1951_s18  ;;  %s2392_s15 = smov (!%p1954_p0), 96  }
  0x28   : > { %v517_v2 = vld [vmem:[%s510_s29] sm:$0xff]  ;;  %vm519_vm0 = vcmask 261120   ;;  %v518_v3 = vld [vmem:[%s510_s29 + $0x8] sm:$0xff]  ;;  %v565_v5 = vld [vmem:[%s2931_s4 + $0x10] sm:$0xff]  ;;  %v548_v29 = vlaneseq  ;;  %vm673_vm1 = vcmask 523264  }
  0x29   : > { %v520_v4 = vsel %vm519_vm0, %v517_v2, 0.0  ;;  %581 = vrot.lane.b32.xlu1 %v565_v5, %s2392_s15  ;;  %v523_v6 = vsel %vm519_vm0, %v518_v3, 0.0  ;;  %v564_v7 = vld [vmem:[%s2931_s4 + $0x8] sm:$0xff]  ;;  %v566_v8 = vld [vmem:[%s2931_s4 + $0x18] sm:$0xff]  ;;  %v563_v22 = vld [vmem:[%s2931_s4] sm:$0xff] }
  0x2a   : > { %521 = vadd.xlane.f32.xlu0 %v520_v4  ;;  %v1955_v23 = vld [vmem:[%s2932_s5] ss:$0 sm:$0xff]  ;;  %v549_v32 = vshrl.u32 %v548_v29, 7 }
  0x2c   : > { %v550_v33 = vsub.s32 0, %v549_v32 }
  0x2d   : > { %579 = vrot.lane.b32.xlu1 %v564_v7, %s2392_s15 }
  0x2e   : > { %524 = vadd.xlane.f32.xlu0 %v523_v6  ;;  %v551_v34 = vrot.slane %v2556_v0, %v550_v33  ;;  %v559_v37 = vrot.slane %v2561_v1, %v550_v33 }
  0x44   : > { %583 = vrot.lane.b32.xlu0 %v566_v8, %s2392_s15 }
  0x48   : > { %589 = vrot.lane.b32.xlu0 %v1955_v23, %s2392_s15 }
  0x9b   : > { %v582_v13 = vpop.permute.xlu1 %581 }
  0x9f   : > { %v580_v20 = vpop.permute.xlu1 %579 }
  0xb3   : > { %v522_v9 = vpop.xlane.xlu0 %521 }
  0xb4   : > { %v527_v10 = vmul.f32 0.03125, %v522_v9 }
  0xb6   : > { %v529_v11 = vsub.f32 %v517_v2, %v527_v10 }
  0xb7   : > { %v525_v12 = vpop.xlane.xlu0 %524 }
  0xb8   : > { %v528_v14 = vmul.f32 0.03125, %v525_v12  ;;  %v531_v15 = vmul.f32 %v529_v11, %v529_v11 }
  0xba   : > { %v530_v16 = vsub.f32 %v518_v3, %v528_v14  ;;  %v533_v17 = vsel %vm519_vm0, %v531_v15, 0.0 }
  0xbb   : > { %534 = vadd.xlane.f32.xlu1 %v533_v17  ;;  %v584_v18 = vpop.permute.xlu0 %583 }
  0xbc   : > { %v532_v19 = vmul.f32 %v530_v16, %v530_v16  ;;  %2052 = vmatprep.subr.mxu0 %v584_v18 }
  0xbd   : > { %2053 = vmatpush3.msra.mxu0 %v584_v18 }
  0xbe   : > { %v536_v21 = vsel %vm519_vm0, %v532_v19, 0.0  ;;  %2054 = vmatprep.subr.mxu0 %v582_v13 }
  0xbf   : > { %537 = vadd.xlane.f32.xlu1 %v536_v21  ;;  %2055 = vmatpush3.msra.mxu0 %v582_v13  ;;  %v590_v44 = vpop.permute.xlu0 %589 }
  0xc0   : > { %2056 = vmatprep.subr.mxu0 %v580_v20 }
  0xc1   : > { %2057 = vmatpush3.msra.mxu0 %v580_v20 }
  0xd0   : > { %577 = vrot.lane.b32.xlu1 %v563_v22, %s2392_s15 }
 0x144   : > { %v535_v24 = vpop.xlane.xlu1 %534 }
 0x145   : > { %v539_v25 = vmul.f32 0.03125, %v535_v24 }
 0x147   : > { %v541_v26 = vadd.f32 1e-05, %v539_v25 }
 0x148   : > { %v538_v27 = vpop.xlane.xlu1 %537 }
 0x149   : > { %2270 = vrsqrt.f32 %v541_v26  ;;  %v540_v28 = vmul.f32 0.03125, %v538_v27 }
 0x14b   : > { %v542_v30 = vadd.f32 1e-05, %v540_v28 }
 0x14c   : > { %v578_v31 = vpop.permute.xlu1 %577 }
 0x14d   : > { %2272 = vrsqrt.f32 %v542_v30  ;;  %2058 = vmatprep.subr.mxu0 %v578_v31 }
 0x14e   : > { %2059 = vmatpush3.msra.mxu0 %v578_v31 }
 0x156   : > { %v2271_v35 = vpop.eup %2270 }
 0x157   : > { %v545_v36 = vmul.f32 %v2271_v35, %v529_v11 }
 0x159   : > { %v553_v38 = vmul.f32 %v551_v34, %v545_v36 }
 0x15a   : > { %v2273_v39 = vpop.eup %2272 }
 0x15b   : > { %v546_v40 = vmul.f32 %v2273_v39, %v530_v16  ;;  %v561_v41 = vadd.f32 %v559_v37, %v553_v38 }
 0x15d   : > { %v554_v42 = vmul.f32 %v551_v34, %v546_v40  ;;  %2060 = vmatprep.mubr.msk.f32.mxu0 %vm519_vm0, %v561_v41 }
 0x15f   : > { %v562_v43 = vadd.f32 %v559_v37, %v554_v42 }
 0x161   : > { %2061 = vmatmul.mubr.msk.f32.vlgmr.msra.gmra.mxu0 %vm519_vm0, %v562_v43 }
 0x221   : > { %v2062_v45 = vpop.f32.mrf.mxu0 }
 0x222   : > { %v670_v46 = vadd.f32 %v2062_v45, %v590_v44 }
 0x223   : > { %v664_v47 = vpop.f32.mrf.mxu0 }
 0x224   : > { %675 = vst.msk [vmem:[#allocation2 + $0x8] sm:$0xff] %vm673_vm1, %v670_v46  ;;  %v665_v48 = vadd.f32 %v664_v47, %v590_v44 }
 0x226   : > { %674 = vst.msk [vmem:[#allocation2] sm:$0xff] %vm673_vm1, %v665_v48 }
 0x227 PF: > { %v2609_v49 = vld [vmem:[%s2576_s24] sm:$0xff]  ;;  %vm677_vm2 = vcmask 261120   ;;  %v709_v56 = vld [vmem:[%s2931_s4 + $0x18] sm:$0xff]  ;;  %v2393_v57 = vmov 0.0   ;;  %v708_v58 = vld [vmem:[%s2931_s4 + $0x10] sm:$0xff]  ;;  %vm2394_vm3 = vmmov 0   ;;  %v693_v3 = vlaneseq }
 0x228   : > { %v678_v50 = vsel %vm677_vm2, %v2609_v49, 0.0  ;;  %2063 = vmatprep.subr.mxu1 %v2393_v57  ;;  %2071 = vmatprep.mubr.msk.f32.mxu1 %vm2394_vm3, %v2393_v57  ;;  %v707_v59 = vld [vmem:[%s2931_s4 + $0x8] sm:$0xff]  ;;  %v706_v60 = vld [vmem:[%s2931_s4] sm:$0xff]  ;;  %s2395_s27 = smov 120   ;;  %s2396_s21 = smov 112   ;;  %vm803_vm4 = vcmask 64512  }
 0x229   : > { %679 = vadd.xlane.f32.xlu0 %v678_v50  ;;  %2064 = vmatpush3.msra.mxu1 %v709_v56  ;;  %v694_v4 = vshrl.u32 %v693_v3, 7  ;;  %s1960_s19 = sshll.u32 %s2374_s16, 3  ;;  %v2683_v29 = vand.u32 127, %v693_v3  ;;  %vm884_vm6 = vcmask 130048   ;;  %s2397_s28 = smov 80   ;;  %vm1515_vm7 = vcmask 261248  }
 0x22a   : > { %2081 = vmatprep.subr.mxu0 %v2393_v57  ;;  %2065 = vmatprep.subr.mxu1 %v2393_v57  ;;  %v795_v26 = vstv %s1960_s19  ;;  %s2398_s24 = smov 104   ;;  %s2399_s15 = smov 96  }
 0x22b   : > { %2085 = vmatprep.mubr.msk.f32.mxu0 %vm2394_vm3, %v2393_v57  ;;  %2066 = vmatpush3.msra.mxu1 %v708_v58  ;;  %v2637_v61 = vld [vmem:[#allocation2 + $0x8] sm:$0xff]  ;;  %v695_v5 = vsub.s32 0, %v694_v4  ;;  %v2681_v28 = vadd.s32 %v795_v26, %v694_v4  ;;  %s2400_s2 = smov 88   ;;  %s2401_s13 = smov 72  }
 0x22c   : > { %2067 = vmatprep.subr.mxu1 %v2393_v57  ;;  %979 = vrot.lane.b32.xlu1 %v2637_v61, %s2395_s27  ;;  %s2402_s20 = smov 8   ;;  %s1854_s29 = sshll.u32 %s497_s25, 4  ;;  %s1855_s29 = int_to_ptr.vmem [resolvable:$true] %s1854_s29 }
 0x22d   : > { %2068 = vmatpush3.msra.mxu1 %v707_v59  ;;  %v696_v6 = vrot.slane %v2556_v0, %v695_v5  ;;  %v703_v9 = vrot.slane %v2561_v1, %v695_v5  ;;  %v2646_v12 = vld [vmem:[#allocation2] sm:$0xff]  ;;  %vm799_vm5 = vcmp.le.s32.totalorder %v2683_v29, %v2681_v28 }
 0x22e   : > { %2069 = vmatprep.subr.mxu1 %v2393_v57  ;;  %v1958_v0 = vld [vmem:[%s2932_s5] ss:$0 sm:$0xff] }
 0x22f   : > { %2070 = vmatpush3.msra.mxu1 %v706_v60 }
 0x230   : > { %2074 = vmatprep.subr.mxu1 %v2393_v57  ;;  %977 = vrot.lane.b32.xlu1 %v2646_v12, %s2395_s27 }
 0x234   : > { %1164 = vrot.lane.b32.xlu1 %v2637_v61, %s2396_s21 }
 0x238   : > { %1162 = vrot.lane.b32.xlu1 %v2646_v12, %s2396_s21 }
 0x29e   : > { %v980_v17 = vpop.permute.xlu1 %979 }
 0x2a2   : > { %v978_v18 = vpop.permute.xlu1 %977 }
 0x2a6   : > { %v1165_v19 = vpop.permute.xlu1 %1164 }
 0x2aa   : > { %v1163_v21 = vpop.permute.xlu1 %1162 }
 0x2b2   : > { %v680_v51 = vpop.xlane.xlu0 %679 }
 0x2b3   : > { %v682_v52 = vmul.f32 0.03125, %v680_v51 }
 0x2b5   : > { %v683_v53 = vsub.f32 %v2609_v49, %v682_v52 }
 0x2b7   : > { %v684_v54 = vmul.f32 %v683_v53, %v683_v53 }
 0x2b9   : > { %v685_v55 = vsel %vm677_vm2, %v684_v54, 0.0 }
 0x2ba   : > { %686 = vadd.xlane.f32.xlu0 %v685_v55 }
 0x343   : > { %v687_v62 = vpop.xlane.xlu0 %686 }
 0x344   : > { %v688_v63 = vmul.f32 0.03125, %v687_v62 }
 0x346   : > { %v689_v2 = vadd.f32 1e-05, %v688_v63 }
 0x348   : > { %2274 = vrsqrt.f32 %v689_v2 }
 0x355   : > { %v2275_v7 = vpop.eup %2274 }
 0x356   : > { %v691_v8 = vmul.f32 %v2275_v7, %v683_v53 }
 0x358   : > { %v698_v10 = vmul.f32 %v696_v6, %v691_v8 }
 0x35a   : > { %v705_v11 = vadd.f32 %v703_v9, %v698_v10 }
 0x35c   : > { %2072 = vmatmul.mubr.msk.f32.vlgmr.msra.gmra.mxu1 %vm677_vm2, %v705_v11 }
 0x35d   : > { %2078 = vmatprep.mubr.msk.f32.mxu1 %vm2394_vm3, %v2393_v57  ;;  %2075 = vmatpush3.xpose.msk.msra.mxu1 %vm803_vm4, %v2637_v61 }
 0x35e   : > { %2076 = vmatprep.subr.mxu1 %v2393_v57 }
 0x361   : > { %2077 = vmatpush3.xpose.msk.msra.mxu1 %vm803_vm4, %v2646_v12 }
 0x362   : > { %2088 = vmatprep.subr.mxu1 %v2393_v57 }
 0x41c   : > { %v786_v1 = vpop.f32.mrf.mxu1 }
 0x41d   : > { %v787_v13 = vadd.f32 %v1958_v0, %v786_v1 }
 0x41e   : > { %v2073_v14 = vpop.f32.mrf.mxu1 }
 0x41f   : > { %v790_v15 = vmul.f32 0.35355338, %v787_v13 }
 0x421   : > { %791 = vst.msk [vmem:[#allocation3] sm:$0xff] %vm677_vm2, %v790_v15 }
 0x428   : > { %v1154_v16 = vld [vmem:[#allocation3] sm:$0xff] }
 0x429   : > { %1158 = vrot.lane.b32.xlu1 %v1154_v16, %s2396_s21  ;;  %975 = vrot.lane.b32.xlu0 %v1154_v16, %s2395_s27  ;;  %s2967_s27 = sld [smem:[#allocation18_spill]] }
 0x42a   : > { %2079 = vmatmul.mubr.msk.f32.vlgmr.msra.gmra.mxu1 %vm803_vm4, %v1154_v16 }
 0x42b   : > { %2089 = vmatpush3.xpose.msk.msra.mxu1 %vm803_vm4, %v980_v17  ;;  %2092 = vmatprep.mubr.msk.f32.mxu1 %vm2394_vm3, %v2393_v57 }
 0x42c   : > { %2090 = vmatprep.subr.mxu1 %v2393_v57 }
 0x42f   : > { %2091 = vmatpush3.xpose.msk.msra.mxu1 %vm803_vm4, %v978_v18 }
 0x430   : > { %2102 = vmatprep.subr.mxu1 %v2393_v57 }
 0x49b   : > { %v976_v20 = vpop.permute.xlu0 %975  ;;  %v1159_v22 = vpop.permute.xlu1 %1158 }
 0x49c   : > { %2093 = vmatmul.mubr.msk.f32.vlgmr.msra.gmra.mxu1 %vm803_vm4, %v976_v20 }
 0x49d   : > { %2103 = vmatpush3.xpose.msk.msra.mxu1 %vm803_vm4, %v1165_v19  ;;  %2106 = vmatprep.mubr.msk.f32.mxu1 %vm2394_vm3, %v2393_v57 }
 0x49e   : > { %2104 = vmatprep.subr.mxu1 %v2393_v57 }
 0x4a1   : > { %2105 = vmatpush3.xpose.msk.msra.mxu1 %vm803_vm4, %v1163_v21 }
 0x4a2   : > { %2109 = vmatprep.subr.mxu1 %v2393_v57 }
 0x4a4   : > { %2107 = vmatmul.mubr.msk.f32.vlgmr.msra.gmra.mxu1 %vm803_vm4, %v1159_v22 }
 0x4a5   : > { %2113 = vmatprep.mubr.msk.f32.mxu1 %vm2394_vm3, %v2393_v57 }
 0x4ea   : > { %v879_v23 = vpop.f32.mrf.mxu1 }
 0x4eb   : > { %v883_v48 = vsel %vm799_vm5, %v879_v23, -1e+30 }
 0x4ec   : > { %v2080_v24 = vpop.f32.mrf.mxu1  ;;  %v885_v50 = vsel %vm884_vm6, %v883_v48, -inf }
 0x55c   : > { %v1053_v25 = vpop.f32.mrf.mxu1 }
 0x55d   : > { %v1057_v34 = vsel %vm799_vm5, %v1053_v25, -1e+30 }
 0x55e   : > { %v2094_v27 = vpop.f32.mrf.mxu1  ;;  %v1058_v35 = vsel %vm884_vm6, %v1057_v34, -inf }
 0x564   : > { %v1238_v30 = vpop.f32.mrf.mxu1 }
 0x565   : > { %v1242_v31 = vsel %vm799_vm5, %v1238_v30, -1e+30 }
 0x566   : > { %v2108_v32 = vpop.f32.mrf.mxu1  ;;  %v1243_v33 = vsel %vm884_vm6, %v1242_v31, -inf }
 0x567   : > { %1244 = vmax.xlane.f32.xlu1 %v1243_v33  ;;  %v1521_v33 = vld [vmem:[%s2933_s6 + $0x18] sm:$0xff] }
 0x578   : > { %1256 = vrot.lane.b32.xlu1 %v2637_v61, %s2397_s28 }
 0x57c   : > { %1337 = vrot.lane.b32.xlu1 %v2637_v61, %s2398_s24 }
 0x580   : > { %1335 = vrot.lane.b32.xlu1 %v2646_v12, %s2398_s24 }
 0x584   : > { %1333 = vrot.lane.b32.xlu1 %v1154_v16, %s2398_s24 }
 0x5a8   : > { %1059 = vmax.xlane.f32.xlu1 %v1058_v35  ;;  %v1519_v35 = vld [vmem:[%s2933_s6 + $0x8] sm:$0xff] }
 0x5f0   : > { %v1245_v36 = vpop.xlane.xlu1 %1244 }
 0x5f1   : > { %v1246_v37 = vsub.f32 %v1242_v31, %v1245_v36  ;;  %v1518_v36 = vld [vmem:[%s2933_s6] sm:$0xff] }
 0x5f3   : > { %v1247_v38 = vmul.f32 1.442695, %v1246_v37 }
 0x5f4   : > { %v1257_v39 = vpop.permute.xlu1 %1256 }
 0x5f5   : > { %2276 = vpow2.f32 %v1247_v38  ;;  %2110 = vmatpush3.msra.mxu1 %v1257_v39 }
 0x5f6   : > { %2111 = vmatprep.subr.mxu1 %v2393_v57 }
 0x5f8   : > { %v1338_v42 = vpop.permute.xlu1 %1337 }
 0x5fc   : > { %v1336_v43 = vpop.permute.xlu1 %1335 }
 0x600   : > { %v1334_v44 = vpop.permute.xlu1 %1333 }
 0x602   : > { %v2277_v40 = vpop.eup %2276 }
 0x603   : > { %v1249_v41 = vsel %vm884_vm6, %v2277_v40, 0.0 }
 0x604   : > { %1250 = vadd.xlane.f32.xlu0 %v1249_v41  ;;  %v1977_v41 = vld [vmem:[%s2934_s7] ss:$0 sm:$0xff] }
 0x61a   : > { %1254 = vrot.lane.b32.xlu0 %v2646_v12, %s2397_s28  ;;  %s2968_s28 = sld [smem:[#allocation19_spill]] }
 0x631   : > { %v1060_v45 = vpop.xlane.xlu1 %1059 }
 0x632   : > { %v1061_v46 = vsub.f32 %v1057_v34, %v1060_v45  ;;  %v1520_v34 = vld [vmem:[%s2933_s6 + $0x10] sm:$0xff] }
 0x634   : > { %v1062_v47 = vmul.f32 1.442695, %v1061_v46 }
 0x636   : > { %2278 = vpow2.f32 %v1062_v47 }
 0x639   : > { %886 = vmax.xlane.f32.xlu0 %v885_v50 }
 0x643   : > { %v2705_v51 = vpop.eup %2278 }
 0x644   : > { %v1064_v52 = vsel %vm884_vm6, %v2705_v51, 0.0 }
 0x645   : > { %1065 = vadd.xlane.f32.xlu1 %v1064_v52 }
 0x656   : > { %898 = vrot.lane.b32.xlu1 %v2637_v61, %s2399_s15 }
 0x65a   : > { %1071 = vrot.lane.b32.xlu1 %v2637_v61, %s2400_s2 }
 0x65e   : > { %1069 = vrot.lane.b32.xlu1 %v2646_v12, %s2400_s2  ;;  %s1985_s2 = sshll.u32 %s2378_s17, 1  ;;  %s2298_s17 = scalar_lea.vmem %s1855_s29, 128 }
 0x65f   : > { %p2299_p1 = scmp.ne.s32.totalorder %s1855_s29, %s2298_s17 }
 0x661   : > { %p2300_p2 = pnand %p2299_p1, %p2531_p3 }
 0x662   : > { %1427 = vrot.lane.b32.xlu1 %v2646_v12, %s2401_s13 }
 0x663   : > { %p2301_p4 = pneg %p2300_p2 }
 0x68d   : > { %v1251_v53 = vpop.xlane.xlu0 %1250 }
 0x68e   : > { %2280 = vrcp.f32 %v1251_v53  ;;  %v1635_v53 = vld [vmem:[%s2937_s10 + $0x18] sm:$0xff] }
 0x691   : > { %v1255_v54 = vpop.permute.xlu0 %1254 }
 0x692   : > { %2112 = vmatpush3.msra.mxu1 %v1255_v54  ;;  %v1633_v54 = vld [vmem:[%s2937_s10 + $0x8] sm:$0xff] }
 0x693   : > { %2116 = vmatprep.subr.mxu1 %v2393_v57 }
 0x69b   : > { %v2281_v55 = vpop.eup %2280 }
 0x69c   : > { %v1253_v56 = vmul.f32 %v2281_v55, %v2277_v40  ;;  %v1632_v55 = vld [vmem:[%s2937_s10] sm:$0xff] }
 0x69e   : > { %2114 = vmatmul.mubr.msk.f32.vlgmr.msra.gmra.mxu1 %vm884_vm6, %v1253_v56 }
 0x69f   : > { %2117 = vmatpush3.xpose.msk.msra.mxu1 %vm803_vm4, %v1338_v42  ;;  %2120 = vmatprep.mubr.msk.f32.mxu1 %vm2394_vm3, %v2393_v57 }
 0x6a0   : > { %2118 = vmatprep.subr.mxu1 %v2393_v57 }
 0x6a3   : > { %2119 = vmatpush3.xpose.msk.msra.mxu1 %vm803_vm4, %v1336_v43 }
 0x6a4   : > { %2141 = vmatprep.subr.mxu1 %v2393_v57 }
 0x6a6   : > { %2121 = vmatmul.mubr.msk.f32.vlgmr.msra.gmra.mxu1 %vm803_vm4, %v1334_v44 }
 0x6a7   : > { %2149 = vmatprep.mubr.msk.f32.mxu1 %vm2394_vm3, %v2393_v57  ;;  %2142 = vmatpush3.msra.mxu1 %v1635_v53 }
 0x6a8   : > { %2143 = vmatprep.subr.mxu1 %v2393_v57 }
 0x6c2   : > { %v887_v58 = vpop.xlane.xlu0 %886 }
 0x6c3   : > { %v888_v59 = vsub.f32 %v883_v48, %v887_v58 }
 0x6c5   : > { %v889_v60 = vmul.f32 1.442695, %v888_v59 }
 0x6c7   : > { %2282 = vpow2.f32 %v889_v60 }
 0x6ce   : > { %v1066_v8 = vpop.xlane.xlu1 %1065 }
 0x6d2   : > { %v899_v9 = vpop.permute.xlu1 %898 }
 0x6d3   : > { %2082 = vmatpush3.msra.mxu0 %v899_v9  ;;  %v1754_v9 = vld [vmem:[%s2939_s12 + $0x58] sm:$0xff] }
 0x6d4   : > { %v2283_v6 = vpop.eup %2282  ;;  %2083 = vmatprep.subr.mxu0 %v2393_v57 }
 0x6d5   : > { %v891_v7 = vsel %vm884_vm6, %v2283_v6, 0.0 }
 0x6d6   : > { %v1072_v14 = vpop.permute.xlu1 %1071 }
 0x75e   : > { %v2723_v62 = vpop.f32.mrf.mxu1 }
 0x760   : > { %v2115_v63 = vpop.f32.mrf.mxu1 }
 0x766   : > { %v1411_v2 = vpop.f32.mrf.mxu1 }
 0x767   : > { %v1415_v3 = vsel %vm799_vm5, %v1411_v2, -1e+30  ;;  %v1980_v2 = vld [vmem:[%s2936_s9] ss:$0 sm:$0xff] }
 0x768   : > { %v2122_v4 = vpop.f32.mrf.mxu1  ;;  %v1416_v5 = vsel %vm884_vm6, %v1415_v3, -inf }
 0x769   : > { %1417 = vmax.xlane.f32.xlu0 %v1416_v5  ;;  %v1758_v5 = vld [vmem:[%s2939_s12 + $0x78] sm:$0xff] }
 0x76d   : > { %892 = vadd.xlane.f32.xlu0 %v891_v7  ;;  %v1756_v7 = vld [vmem:[%s2939_s12 + $0x68] sm:$0xff] }
 0x783   : > { %896 = vrot.lane.b32.xlu0 %v2646_v12, %s2399_s15  ;;  %v1070_v12 = vpop.permute.xlu1 %1069  ;;  %s2403_s15 = smov 16  }
 0x787   : > { %v1428_v23 = vpop.permute.xlu1 %1427 }
 0x7f2   : > { %v1418_v10 = vpop.xlane.xlu0 %1417 }
 0x7f3   : > { %v1419_v11 = vsub.f32 %v1415_v3, %v1418_v10  ;;  %v1753_v10 = vld [vmem:[%s2939_s12 + $0x50] sm:$0xff] }
 0x7f5   : > { %v1420_v0 = vmul.f32 1.442695, %v1419_v11  ;;  %v1752_v11 = vld [vmem:[%s2939_s12 + $0x48] sm:$0xff] }
 0x7f6   : > { %v893_v1 = vpop.xlane.xlu0 %892 }
 0x7f7   : > { %2284 = vpow2.f32 %v1420_v0  ;;  %v1751_v0 = vld [vmem:[%s2939_s12 + $0x40] sm:$0xff] }
 0x7f8   : > { %2286 = vrcp.f32 %v893_v1  ;;  %v1750_v1 = vld [vmem:[%s2939_s12 + $0x38] sm:$0xff] }
 0x7f9   : > { %2288 = vrcp.f32 %v1066_v8  ;;  %v1755_v8 = vld [vmem:[%s2939_s12 + $0x60] sm:$0xff] }
 0x7fa   : > { %v897_v13 = vpop.permute.xlu0 %896 }
 0x7fb   : > { %2084 = vmatpush3.msra.mxu0 %v897_v13  ;;  %v1749_v13 = vld [vmem:[%s2939_s12 + $0x30] sm:$0xff] }
 0x7fc   : > { %2095 = vmatprep.subr.mxu0 %v2393_v57 }
 0x804   : > { %v2285_v15 = vpop.eup %2284 }
 0x805   : > { %v2287_v16 = vpop.eup %2286  ;;  %v1422_v17 = vsel %vm884_vm6, %v2285_v15, 0.0 }
 0x806   : > { %1423 = vadd.xlane.f32.xlu0 %v1422_v17  ;;  %v895_v18 = vmul.f32 %v2287_v16, %v2283_v6  ;;  %v2289_v19 = vpop.eup %2288  ;;  %v1757_v6 = vld [vmem:[%s2939_s12 + $0x70] sm:$0xff]  ;;  %v1746_v16 = vld [vmem:[%s2939_s12 + $0x18] sm:$0xff] }
 0x807   : > { %v1068_v20 = vmul.f32 %v2289_v19, %v2705_v51  ;;  %v1745_v17 = vld [vmem:[%s2939_s12 + $0x10] sm:$0xff]  ;;  %v1743_v19 = vld [vmem:[%s2939_s12] sm:$0xff] }
 0x808   : > { %2086 = vmatmul.mubr.msk.f32.vlgmr.msra.gmra.mxu0 %vm884_vm6, %v895_v18  ;;  %v1744_v18 = vld [vmem:[%s2939_s12 + $0x8] sm:$0xff] }
 0x809   : > { %2096 = vmatpush3.msra.mxu0 %v1072_v14  ;;  %2099 = vmatprep.mubr.msk.f32.mxu0 %vm2394_vm3, %v2393_v57  ;;  %v1748_v14 = vld [vmem:[%s2939_s12 + $0x28] sm:$0xff] }
 0x80a   : > { %2097 = vmatprep.subr.mxu0 %v2393_v57 }
 0x80b   : > { %2098 = vmatpush3.msra.mxu0 %v1070_v12  ;;  %v1981_v12 = vld [vmem:[%s2938_s11] ss:$0 sm:$0xff] }
 0x80c   : > { %2100 = vmatmul.mubr.msk.f32.vlgmr.msra.gmra.mxu0 %vm884_vm6, %v1068_v20  ;;  %2123 = vmatprep.subr.mxu0 %v2393_v57 }
 0x80d   : > { %2127 = vmatprep.mubr.msk.f32.mxu0 %vm2394_vm3, %v2393_v57 }
 0x81c   : > { %1429 = vrot.lane.b32.xlu0 %v2637_v61, %s2401_s13  ;;  %s1850_s13 = sadd.s32 %s2374_s16, %s1985_s2  ;;  %s1839_s16 = scalar_lea.sflag [#allocation6], %s495_s22 }
 0x81d   : > { %s1986_s21 = sshll.u32 %s1850_s13, 7 }
 0x81e   : > { %s1852_s24 = scalar_lea.hbm %s2968_s28, %s1986_s21 }
 0x88f   : > { %v1424_v21 = vpop.xlane.xlu0 %1423 }
 0x890   : > { %2290 = vrcp.f32 %v1424_v21 }
 0x893   : > { %v1430_v22 = vpop.permute.xlu0 %1429 }
 0x894   : > { %2124 = vmatpush3.msra.mxu0 %v1430_v22 }
 0x895   : > { %2125 = vmatprep.subr.mxu0 %v2393_v57 }
 0x896   : > { %2126 = vmatpush3.msra.mxu0 %v1428_v23 }
 0x897   : > { %2130 = vmatprep.subr.mxu0 %v2393_v57 }
 0x89d   : > { %v2291_v24 = vpop.eup %2290 }
 0x89e   : > { %v1426_v25 = vmul.f32 %v2291_v24, %v2285_v15  ;;  %v1747_v15 = vld [vmem:[%s2939_s12 + $0x20] sm:$0xff] }
 0x8a0   : > { %2128 = vmatmul.mubr.msk.f32.vlgmr.msra.gmra.mxu0 %vm884_vm6, %v1426_v25 }
 0x8a1   : > { %2138 = vmatprep.mubr.msk.f32.mxu0 %vm2394_vm3, %v2393_v57  ;;  %2131 = vmatpush3.msra.mxu0 %v1521_v33 }
 0x8a2   : > { %2132 = vmatprep.subr.mxu0 %v2393_v57 }
 0x8a3   : > { %2133 = vmatpush3.msra.mxu0 %v1520_v34 }
 0x8a4   : > { %2134 = vmatprep.subr.mxu0 %v2393_v57 }
 0x8a5   : > { %2135 = vmatpush3.msra.mxu0 %v1519_v35 }
 0x8a6   : > { %2136 = vmatprep.subr.mxu0 %v2393_v57 }
 0x8a7   : > { %2137 = vmatpush3.msra.mxu0 %v1518_v36 }
 0x8a8   : > { %2152 = vmatprep.subr.mxu0 %v2393_v57 }
 0x8c8   : > { %v971_v26 = vpop.f32.mrf.mxu0 }
 0x8ca   : > { %v2087_v27 = vpop.f32.mrf.mxu0 }
 0x8cc   : > { %v1144_v61 = vpop.f32.mrf.mxu0 }
 0x8cd   : > { %1149 = vrot.lane.b32.xlu1 %v1144_v61, %s2402_s20 }
 0x8ce   : > { %v2101_v28 = vpop.f32.mrf.mxu0 }
 0x93f   : > { %v1150_v29 = vpop.permute.xlu1 %1149 }
 0x940   : > { %v1152_v30 = vsel %vm803_vm4, %v971_v26, %v1150_v29 }
 0x941   : > { %1153 = vst.msk [vmem:[#allocation4] sm:$0xff] %vm884_vm6, %v1152_v30 }
 0x960   : > { %v1502_v31 = vpop.f32.mrf.mxu0 }
 0x961   : > { %1507 = vrot.lane.b32.xlu0 %v1502_v31, %s2402_s20 }
 0x962   : > { %v2129_v32 = vpop.f32.mrf.mxu0 }
 0x9d3   : > { %v1508_v37 = vpop.permute.xlu0 %1507 }
 0x9d4   : > { %v1510_v38 = vsel %vm803_vm4, %v2723_v62, %v1508_v37  ;;  %v1979_v62 = vld [vmem:[%s2935_s8] ss:$0 sm:$0xff] }
 0x9d5   : > { %1512 = vrot.lane.b32.xlu0 %v1510_v38, %s2403_s15  ;;  %s2404_s15 = smov [#allocation5]  }
 0x9d6   : > { %s2302_s2 = sshll.u32 %s2404_s15, 4  ;;  %s2303_s2 = int_to_ptr.vmem [resolvable:$false] %s2302_s2 }
 0x9d7   : > { %s2304_s13 = scalar_lea.vmem %s2303_s2, 256  ;;  %p2305_p5 = scmp.lt.s32.totalorder %s1855_s29, %s2303_s2 }
 0x9d8   : > { %p2306_p6 = scmp.lt.s32.totalorder %s2304_s13, %s2298_s17 }
 0x9da   : > { %p2307_p7 = por %p2306_p6, %p2305_p5 }
 0x9dc   : > { %p2308_p9 = pnand %p2307_p7, %p2301_p4 }
 0xa47   : > { %v1513_v39 = vpop.permute.xlu0 %1512 }
 0xa48   : > { %1516 = vst.msk [vmem:[#allocation4] sm:$0xff] %vm1515_vm7, %v1513_v39 }
 0xa4f   : > { %v1517_v40 = vld [vmem:[#allocation4] sm:$0xff] }
 0xa50   : > { %2139 = vmatmul.mubr.msk.f32.vlgmr.msra.gmra.mxu0 %vm677_vm2, %v1517_v40 }
 0xa51   : > { %2184 = vmatprep.mubr.msk.f32.mxu0 %vm2394_vm3, %v2393_v57  ;;  %2153 = vmatpush3.msra.mxu0 %v1758_v5 }
 0xa52   : > { %2154 = vmatprep.subr.mxu0 %v2393_v57 }
 0xa53   : > { %2155 = vmatpush3.msra.mxu0 %v1757_v6 }
 0xa54   : > { %2156 = vmatprep.subr.mxu0 %v2393_v57 }
 0xa55   : > { %2157 = vmatpush3.msra.mxu0 %v1756_v7 }
 0xa56   : > { %2158 = vmatprep.subr.mxu0 %v2393_v57 }
 0xa57   : > { %2159 = vmatpush3.msra.mxu0 %v1755_v8 }
 0xa58   : > { %2160 = vmatprep.subr.mxu0 %v2393_v57 }
 0xa59   : > { %2161 = vmatpush3.msra.mxu0 %v1754_v9 }
 0xa5a   : > { %2162 = vmatprep.subr.mxu0 %v2393_v57 }
 0xa5b   : > { %2163 = vmatpush3.msra.mxu0 %v1753_v10 }
 0xa5c   : > { %2164 = vmatprep.subr.mxu0 %v2393_v57 }
 0xa5d   : > { %2165 = vmatpush3.msra.mxu0 %v1752_v11 }
 0xa5e   : > { %2166 = vmatprep.subr.mxu0 %v2393_v57 }
 0xa5f   : > { %2167 = vmatpush3.msra.mxu0 %v1751_v0 }
 0xa60   : > { %2168 = vmatprep.subr.mxu0 %v2393_v57 }
 0xa61   : > { %2169 = vmatpush3.msra.mxu0 %v1750_v1 }
 0xa62   : > { %2170 = vmatprep.subr.mxu0 %v2393_v57 }
 0xa63   : > { %2171 = vmatpush3.msra.mxu0 %v1749_v13 }
 0xa64   : > { %2172 = vmatprep.subr.mxu0 %v2393_v57 }
 0xa65   : > { %2173 = vmatpush3.msra.mxu0 %v1748_v14 }
 0xa66   : > { %2174 = vmatprep.subr.mxu0 %v2393_v57 }
 0xa67   : > { %2175 = vmatpush3.msra.mxu0 %v1747_v15 }
 0xa68   : > { %2176 = vmatprep.subr.mxu0 %v2393_v57 }
 0xa69   : > { %2177 = vmatpush3.msra.mxu0 %v1746_v16 }
 0xa6a   : > { %2178 = vmatprep.subr.mxu0 %v2393_v57 }
 0xa6b   : > { %2179 = vmatpush3.msra.mxu0 %v1745_v17 }
 0xa6c   : > { %2180 = vmatprep.subr.mxu0 %v2393_v57 }
 0xa6d   : > { %2181 = vmatpush3.msra.mxu0 %v1744_v18 }
 0xa6e   : > { %2182 = vmatprep.subr.mxu0 %v2393_v57 }
 0xa6f   : > { %2183 = vmatpush3.msra.mxu0 %v1743_v19 }
 0xb10   : > { %v1598_v42 = vpop.f32.mrf.mxu0 }
 0xb11   : > { %v1599_v43 = vadd.f32 %v1977_v41, %v1598_v42 }
 0xb12   : > { %v2140_v44 = vpop.f32.mrf.mxu0 }
 0xb13   : > { %v2777_v45 = vadd.f32 %v1599_v43, %v2609_v49  ;;  %v1634_v49 = vld [vmem:[%s2937_s10 + $0x10] sm:$0xff] }
 0xb14   : > { %2144 = vmatpush3.msra.mxu1 %v1634_v49 }
 0xb15   : > { %v1605_v46 = vsel %vm677_vm2, %v2777_v45, 0.0  ;;  %2145 = vmatprep.subr.mxu1 %v2393_v57 }
 0xb16   : > { %1606 = vadd.xlane.f32.xlu1 %v1605_v46  ;;  %2146 = vmatpush3.msra.mxu1 %v1633_v54 }
 0xb17   : > { %2147 = vmatprep.subr.mxu1 %v2393_v57 }
 0xb18   : > { %2148 = vmatpush3.msra.mxu1 %v1632_v55 }
 0xb9f   : > { %v1607_v47 = vpop.xlane.xlu1 %1606 }
 0xba0   : > { %v1608_v48 = vmul.f32 0.03125, %v1607_v47  ;;  %v1983_v47 = vld [vmem:[%s2967_s27] ss:$0 sm:$0xff] }
 0xba2   : > { %v1609_v50 = vsub.f32 %v2777_v45, %v1608_v48 }
 0xba4   : > { %v1610_v51 = vmul.f32 %v1609_v50, %v1609_v50 }
 0xba6   : > { %v1611_v52 = vsel %vm677_vm2, %v1610_v51, 0.0 }
 0xba7   : > { %1612 = vadd.xlane.f32.xlu0 %v1611_v52 }
 0xc30   : > { %v1613_v56 = vpop.xlane.xlu0 %1612 }
 0xc31   : > { %v1614_v58 = vmul.f32 0.03125, %v1613_v56 }
 0xc33   : > { %v1615_v59 = vadd.f32 1e-05, %v1614_v58 }
 0xc35   : > { %2292 = vrsqrt.f32 %v1615_v59 }
 0xc42   : > { %v2293_v60 = vpop.eup %2292 }
 0xc43   : > { %v1617_v63 = vmul.f32 %v2293_v60, %v1609_v50 }
 0xc45   : > { %v1624_v3 = vmul.f32 %v1979_v62, %v1617_v63 }
 0xc47   : > { %v1631_v4 = vadd.f32 %v1980_v2, %v1624_v3 }
 0xc49   : > { %2150 = vmatmul.mubr.msk.f32.vlgmr.msra.gmra.mxu1 %vm677_vm2, %v1631_v4 }
 0xd09   : > { %v1712_v20 = vpop.f32.mrf.mxu1 }
 0xd0a   : > { %v1713_v21 = vadd.f32 %v1981_v12, %v1712_v20 }
 0xd0b   : > { %v2151_v22 = vpop.f32.mrf.mxu1 }
 0xd0c   : > { %v1716_v23 = vmul.f32 0.70710677, %v1713_v21  ;;  %v1740_v43 = vmul.f32 0.5, %v1713_v21 }
 0xd0e   : > { %v1717_v24 = vand.u32 2147483647, %v1716_v23  ;;  %vm1737_vm8 = vcmp.ge.f32.partialorder %v1716_v23, 0.0 }
 0xd10   : > { %v1718_v25 = vmul.f32 0.3275911, %v1717_v24  ;;  %v1731_v27 = vsub.f32 0.0, %v1717_v24 }
 0xd12   : > { %v1719_v26 = vadd.f32 1.0, %v1718_v25  ;;  %v1732_v61 = vmul.f32 %v1731_v27, %v1717_v24 }
 0xd14   : > { %2294 = vrcp.f32 %v1719_v26  ;;  %v1733_v30 = vmul.f32 1.442695, %v1732_v61 }
 0xd16   : > { %2296 = vpow2.f32 %v1733_v30 }
 0xd21   : > { %v2295_v28 = vpop.eup %2294 }
 0xd22   : > { %v1722_v29 = vmul.f32 1.0614054, %v2295_v28 }
 0xd23   : > { %v2297_v38 = vpop.eup %2296 }
 0xd24   : > { %v1723_v31 = vadd.f32 -1.4531521, %v1722_v29 }
 0xd26   : > { %v1724_v57 = vmul.f32 %v2295_v28, %v1723_v31 }
 0xd28   : > { %v1725_v32 = vadd.f32 1.4214138, %v1724_v57 }
 0xd2a   : > { %v1726_v33 = vmul.f32 %v2295_v28, %v1725_v32 }
 0xd2c   : > { %v1727_v34 = vadd.f32 -0.28449672, %v1726_v33 }
 0xd2e   : > { %v1728_v35 = vmul.f32 %v2295_v28, %v1727_v34 }
 0xd30   : > { %v1729_v36 = vadd.f32 0.2548296, %v1728_v35 }
 0xd32   : > { %v1730_v37 = vmul.f32 %v2295_v28, %v1729_v36 }
 0xd34   : > { %v1735_v39 = vmul.f32 %v2297_v38, %v1730_v37 }
 0xd36   : > { %v1736_v40 = vsub.f32 1.0, %v1735_v39 }
 0xd38   : > { %v1738_v41 = vsub.f32 0.0, %v1736_v40 }
 0xd3a   : > { %v1739_v42 = vsel %vm1737_vm8, %v1736_v40, %v1738_v41 }
 0xd3b   : > { %v1741_v44 = vadd.f32 1.0, %v1739_v42 }
 0xd3d   : > { %v1742_v46 = vmul.f32 %v1741_v44, %v1740_v43 }
 0xd3f   : > { %2185 = vmatmul.mubr.f32.vlgmr.msra.gmra.mxu0 %v1742_v46 }
 0xdff   : > { %v1832_v48 = vpop.f32.mrf.mxu0 }
 0xe00   : > { %v1833_v50 = vadd.f32 %v1983_v47, %v1832_v48 }
 0xe01   : > { %v2186_v51 = vpop.f32.mrf.mxu0 }
 0xe02   : > { %v1836_v52 = vadd.f32 %v1833_v50, %v2777_v45 }
 0xe04   : > { %1837 = vst.msk [vmem:[%s497_s25] sm:$0xff] %vm677_vm2, %v1836_v52 }
 0xe05   : > { %2311 = shalt.err (!%p2308_p9)
}
 0xe06   : > { %s2312_s20 = scalar_lea.hbm %s1852_s24, 128  ;;  %s2316_s25 = scalar_lea.hbm %s2968_s28, 512 }
 0xe07   : > { %p2313_p10 = scmp.ne.s32.totalorder %s1852_s24, %s2312_s20  ;;  %p2317_p13 = scmp.lt.s32.totalorder %s1852_s24, %s2968_s28 }
 0xe08   : > { %p2318_p0 = scmp.lt.s32.totalorder %s2316_s25, %s2312_s20 }
 0xe09   : > { %p2314_p11 = pnand %p2313_p10, %p2531_p3 }
 0xe0a   : > { %p2319_p1 = por %p2318_p0, %p2317_p13 }
 0xe0b   : > { %p2315_p12 = pneg %p2314_p11 }
 0xe0d   : > { %p2320_p2 = pnand %p2319_p1, %p2315_p12 }
 0xe0f   : > { %2323 = shalt.err (!%p2320_p2)
}
 0xe10   : > { %2187 = dma.vmem_to_hbm [thread:$0]  (%p2531_p3), %s1855_s29, 128, %s1852_s24, %s1839_s16  }
 0xe11 PF: > { %s2969_s21 = sld [smem:[#allocation12_spill]] }
 0xe12   : > { %s2970_s18 = sld [smem:[#allocation8_spill]] }
 0xe17   : > { %p2193_p4 = scmp.ge.s32.totalorder %s2969_s21, 2 }
 0xe18   : > { %s1866_s17 = sand.u32 1, %s2970_s18  }
 0xe19   : > { %p2190_p5 = pnand %p2193_p4, %p2540_p8  ;;  %s1867_s15 = scalar_lea.sflag [#allocation6], %s1866_s17 }
 0xe1b   : > { %p2191_p6 = pneg %p2190_p5 }
 0xe1d   : > { %2357 = dma.done.wait (%p2191_p6), %s1867_s15, 128  }
 0xe1e   : > { %2359 = vsyncadd (%p2191_p6), %s1867_s15, 4294967168  ;;  %s27_s20 = sadd.s32 1, %s2969_s21   ;;  %s2972_s2 = sld [smem:[#allocation9_spill]] }
 0xe1f   : > { %p24_p7 = scmp.ge.s32.totalorder %s27_s20, 6   ;;  %s2973_s15 = sld [smem:[#allocation16_spill]] }
 0xe20   : > { %s2974_s16 = sld [smem:[#allocation10_spill]]  ;;  %s2978_s29 = smov %s2366_s30 }
 0xe21   : > { %s2975_s17 = sld [smem:[#allocation11_spill]]  ;;  %26 = sbr.rel (!%p24_p7) target bundleno = 9 (0x9), region = 118 }
 0xe22   : > { %s2976_s18 = sld [smem:[#allocation13_spill]] }
 0xe23   : > { %s2977_s19 = sld [smem:[#allocation14_spill]] }
 0xe24   : > { %s2979_s30 = smov %s2972_s2 }
 0xe26   :  { %1872 = vsyncpa [#allocation6], 1 }
 0xe27   :  { %1874 = vsyncpa [#allocation6 + $0x1], 1 }

</bundles_post_ra>
